<compile_context>
chip_gen: v7x
topology: tpu7x:2x2x1
jax: 0.10.0
libtpu: 0.0.40
codegen_flags: <defaults>
</compile_context>

<pallas_src>
import jax
import jax.numpy as jnp
import numpy as np
from jax.experimental import pallas as pl
from jax.experimental.pallas import tpu as pltpu

CONV_CHANNELS = (16, 32, 64)
NUM_CLASSES = 10
OUT_PAD = 128          # lane-dense logits width; real logits live in [:, :10]


def _round_up(x, m):
    return (x + m - 1) // m * m


def _conv_geometry(input_size):
    """Static per-conv-layer geometry: list of (H, W, Cin, Cout)."""
    cin, h, w = input_size[0], input_size[1], input_size[2]
    geom = []
    for cout in CONV_CHANNELS:
        assert h % 2 == 0 and w % 2 == 0, "even spatial dims required (MaxPool2d(2,2))"
        geom.append((h, w, cin, cout))
        cin, h, w = cout, h // 2, w // 2
    return geom, (cin, h, w)  # final (C, H, W) feeding the Linear


def init_params(key, input_size=(3, 16, 16)):
    """Deterministic synthetic parameters with the PyTorch module's shapes."""
    geom, (cf, hf, wf) = _conv_geometry(input_size)
    params = {"convs": []}
    for (h, w, cin, cout) in geom:
        key, kw_, kb_ = jax.random.split(key, 3)
        bound = 1.0 / np.sqrt(cin * 9)
        params["convs"].append({
            "w": jax.random.uniform(kw_, (cout, cin, 3, 3), jnp.float32, -bound, bound),
            "b": jax.random.uniform(kb_, (cout,), jnp.float32, -bound, bound),
        })
    key, kw_, kb_ = jax.random.split(key, 3)
    in_features = cf * hf * wf
    bound = 1.0 / np.sqrt(in_features)
    params["linear"] = {
        "w": jax.random.uniform(kw_, (NUM_CLASSES, in_features), jnp.float32, -bound, bound),
        "b": jax.random.uniform(kb_, (NUM_CLASSES,), jnp.float32, -bound, bound),
    }
    return params


def _evenodd_perm(w, cout):
    """Column permutation (j,c) -> (even j's | odd j's), c minor."""
    cols = []
    for j in list(range(0, w, 2)) + list(range(1, w, 2)):
        cols.extend(range(j * cout, (j + 1) * cout))
    return np.asarray(cols, dtype=np.int32)


def repack_params(params, input_size, compute_dtype=jnp.bfloat16):
    """One-time host-side repack into the layouts the fused kernel consumes."""
    geom, (cf, hf, wf) = _conv_geometry(input_size)
    packed = {"conv_w": [], "conv_b": []}
    for li, ((h, w, cin, cout), layer) in enumerate(zip(geom, params["convs"])):
        w4 = layer["w"].astype(jnp.float32)                 # [Cout, Cin, 3, 3]
        cin_pad = _round_up(cin, 8) if li == 0 else cin     # lane-dense layer-1 K
        if cin_pad != cin:
            w4 = jnp.pad(w4, ((0, 0), (0, cin_pad - cin), (0, 0), (0, 0)))
        perm = _evenodd_perm(w, cout)                       # pool-friendly output cols
        taps = []
        for kh in range(3):
            # Output col j reads input col j + (kw-1); fold the column shift and
            # the horizontal zero padding into a shifted block-diagonal, and
            # pre-sum the three kw taps (same LHS, matmul linear in the RHS).
            t = jnp.zeros((w * cin_pad, w * cout), jnp.float32)
            for kw in range(3):
                t = t + jnp.kron(jnp.eye(w, k=-(kw - 1), dtype=jnp.float32),
                                 w4[:, :, kh, kw].T)        # [W*Cin_pad, W*Cout]
            taps.append(t[:, perm])
        packed["conv_w"].append(jnp.stack(taps, axis=0).astype(compute_dtype))  # [3,K,N]
        packed["conv_b"].append(
            jnp.tile(layer["b"], w)[perm][None, :].astype(jnp.float32))         # [1,N]
    # nn.Flatten flattens NCHW: feature = c*hf*wf + ip*wf + jp.  The pooled
    # last-layer lanes are ordered (jp, c), so build per-ip [wf*cf, OUT_PAD]
    # weights in (jp, c) row order; pad the output lanes 10 -> OUT_PAD.
    wl = params["linear"]["w"].reshape(NUM_CLASSES, cf, hf, wf)
    wl = jnp.transpose(wl, (2, 3, 1, 0)).reshape(hf, wf * cf, NUM_CLASSES)
    wl = jnp.pad(wl, ((0, 0), (0, 0), (0, OUT_PAD - NUM_CLASSES)))
    packed["lin_w"] = wl.astype(compute_dtype)                                   # [hf, wf*cf, 128]
    packed["lin_b"] = jnp.pad(params["linear"]["b"],
                              (0, OUT_PAD - NUM_CLASSES))[None, :].astype(jnp.float32)
    return packed


def _make_kernel(geom, bb, act_dtype):
    """Fused conv*3 + linear kernel for one batch block of `bb` images."""
    n_conv = len(geom)

    def kernel(x_ref, *refs):
        conv_w = [refs[2 * i] for i in range(n_conv)]
        conv_b = [refs[2 * i + 1] for i in range(n_conv)]
        lin_w = refs[2 * n_conv]
        lin_b = refs[2 * n_conv + 1]
        o_ref = refs[2 * n_conv + 2]
        acc_ref = refs[2 * n_conv + 3]        # f32 conv accumulator (VMEM)
        pads = refs[2 * n_conv + 4:]          # padded activations for layers 2..n

        # Zero only the two bb-row vertical padding blocks of each next-layer
        # scratch (interior rows are fully overwritten every grid step).
        for li, (h, w, cin, cout) in enumerate(geom[:-1]):
            hp = h // 2
            nxt = pads[li]
            zero = jnp.zeros((bb, nxt.shape[1]), dtype=nxt.dtype)
            nxt[0:bb, :] = zero
            nxt[(hp + 1) * bb:(hp + 2) * bb, :] = zero

        def load_from_input(lo, hi):          # padded-activation rows [lo*bb, hi*bb)
            return x_ref[0, lo * bb:hi * bb, :]

        load = load_from_input
        out_acc = None
        for li, (h, w, cin, cout) in enumerate(geom):
            hp, wp = h // 2, w // 2
            wcout = w * cout
            half = wp * cout
            rows = h * bb
            last = li == n_conv - 1
            w_l = conv_w[li]
            b_l = conv_b[li][...]             # [1, wcout] f32

            # ---- Conv2d(3x3, pad=1): 3 full-height MXU matmuls (kw pre-summed),
            #      accumulated in a f32 VMEM scratch (bounded vreg pressure).
            for kh in range(3):
                lhs = load(kh, kh + h)        # [h*bb, w*cin]  (act_dtype)
                contrib = jnp.dot(lhs, w_l[kh], preferred_element_type=jnp.float32)
                if kh == 0:
                    acc_ref[0:rows, 0:wcout] = contrib
                else:
                    acc_ref[0:rows, 0:wcout] += contrib

            # ---- bias + ReLU + MaxPool2d(2,2), fused with the next layer's
            #      padded scratch (or with Flatten+Linear on the last layer).
            for ip in range(hp):
                yb = acc_ref[(2 * ip) * bb:(2 * ip + 2) * bb, 0:wcout]   # [2bb, wcout]
                yb = jnp.maximum(yb + b_l, 0.0)                          # f32 math
                rmax = jnp.maximum(yb[:bb, :], yb[bb:, :])               # row pool
                pooled = jnp.maximum(rmax[:, :half], rmax[:, half:])     # col pool (even|odd)
                if not last:
                    pads[li][(ip + 1) * bb:(ip + 2) * bb, :] = pooled.astype(act_dtype)
                else:
                    contrib = jnp.dot(pooled.astype(lin_w.dtype), lin_w[ip],
                                      preferred_element_type=jnp.float32)
                    out_acc = contrib if out_acc is None else out_acc + contrib
            if not last:
                load = (lambda r: lambda lo, hi: r[lo * bb:hi * bb, :])(pads[li])

        o_ref[0] = (out_acc + lin_b[...]).astype(o_ref.dtype)

    return kernel


def build_forward(input_size=(3, 16, 16), batch_block=32, compute_dtype=jnp.bfloat16):
    """Returns a jitted forward(packed_params, x_nchw) -> [B, 10]."""
    geom, (cf, hf, wf) = _conv_geometry(input_size)
    c0, h0, w0 = input_size
    cin_pad0 = _round_up(c0, 8)
    bb = batch_block
    pack = 16 if compute_dtype == jnp.bfloat16 else 8
    assert bb % pack == 0, f"batch_block must be a multiple of {pack} for {compute_dtype}"

    kernel = _make_kernel(geom, bb, compute_dtype)

    in_specs = [pl.BlockSpec((1, (h0 + 2) * bb, w0 * cin_pad0), lambda n: (n, 0, 0))]
    for li, (h, w, cin, cout) in enumerate(geom):
        k = w * (cin_pad0 if li == 0 else cin)
        in_specs.append(pl.BlockSpec((3, k, w * cout), lambda n: (0, 0, 0)))
        in_specs.append(pl.BlockSpec((1, w * cout), lambda n: (0, 0)))
    in_specs.append(pl.BlockSpec((hf, wf * cf, OUT_PAD), lambda n: (0, 0, 0)))
    in_specs.append(pl.BlockSpec((1, OUT_PAD), lambda n: (0, 0)))
    out_spec = pl.BlockSpec((1, bb, OUT_PAD), lambda n: (n, 0, 0))

    acc_rows = max(h for (h, w, cin, cout) in geom) * bb
    acc_cols = max(w * cout for (h, w, cin, cout) in geom)
    scratch_shapes = (
        [pltpu.VMEM((acc_rows, acc_cols), jnp.float32)]          # conv accumulator
        + [pltpu.VMEM(((h // 2 + 2) * bb, (w // 2) * cout), compute_dtype)
           for (h, w, cin, cout) in geom[:-1]]                   # padded activations
    )

    @jax.jit
    def forward(packed, x):
        b = x.shape[0]
        b_pad = _round_up(b, bb)
        nb = b_pad // bb
        xi = x.astype(compute_dtype)
        xi = jnp.pad(xi, ((0, b_pad - b), (0, cin_pad0 - c0), (0, 0), (0, 0)))
        # NCHW -> [nb, (H+2)*bb, W*Cpad]: rows = (i, b_local), lanes = (j, c),
        # with one zero row-block of vertical padding per image side.
        xt = jnp.transpose(xi, (0, 2, 3, 1))                     # [Bp, H, W, Cp]
        xt = xt.reshape(nb, bb, h0, w0, cin_pad0).transpose(0, 2, 1, 3, 4)
        x2 = xt.reshape(nb, h0 * bb, w0 * cin_pad0)
        x2 = jnp.pad(x2, ((0, 0), (bb, bb), (0, 0)))

        args = [x2]
        for cw, cb in zip(packed["conv_w"], packed["conv_b"]):
            args += [cw, cb]
        args += [packed["lin_w"], packed["lin_b"]]

        out = pl.pallas_call(
            kernel,
            out_shape=jax.ShapeDtypeStruct((nb, bb, OUT_PAD), jnp.float32),
            grid=(nb,),
            in_specs=in_specs,
            out_specs=out_spec,
            scratch_shapes=scratch_shapes,
            compiler_params=pltpu.CompilerParams(
                dimension_semantics=("parallel",),
                vmem_limit_bytes=32 * 1024 * 1024,   # fits v7x's 64 MiB/TC budget
            ),
        )(*args)
        return out.reshape(b_pad, OUT_PAD)[:b, :NUM_CLASSES]

    return forward


def reference_forward(params, x):
    """Pure-JAX reference with the exact PyTorch forward semantics (NCHW)."""
    y = x
    for layer in params["convs"]:
        y = jax.lax.conv_general_dilated(
            y, layer["w"], window_strides=(1, 1), padding=((1, 1), (1, 1)),
            dimension_numbers=("NCHW", "OIHW", "NCHW"))
        y = jnp.maximum(y + layer["b"][None, :, None, None], 0.0)
        b, c, h, w = y.shape
        y = y.reshape(b, c, h // 2, 2, w // 2, 2).max(axis=(3, 5))
    return y.reshape(y.shape[0], -1) @ params["linear"]["w"].T + params["linear"]["b"]


if __name__ == "__main__":
    key = jax.random.PRNGKey(0)
    kp, kx = jax.random.split(key)
    input_size = (3, 16, 16)      # (C, H, W); pools cleanly 16 -> 8 -> 4 -> 2
    batch = 2

    params = init_params(kp, input_size)
    packed = repack_params(params, input_size)             # one-time bf16 weight repack
    # bb=16 keeps the demo light; use 32-64 (multiple of 16) for throughput,
    # and on v7x pick bb so nb = B/bb stays >= 2 and even.
    forward = build_forward(input_size, batch_block=16)

    x = jax.random.normal(kx, (batch,) + input_size, jnp.float32)  # NCHW

    out = jax.block_until_ready(forward(packed, x))
    assert out.shape == (batch, NUM_CLASSES), out.shape

    # Correctness check against a pure-JAX reference (f32).
    ref = jax.block_until_ready(reference_forward(params, x))
    np.testing.assert_allclose(np.asarray(out), np.asarray(ref), rtol=5e-2, atol=5e-2)

    print("KERNEL_OK")
</pallas_src>

<mosaic_0001>
module attributes {stable_mosaic.version = 11 : i64} {
  func.func @kernel(%arg0: i32, %arg1: memref<1x288x128xbf16, #tpu.memory_space<vmem>>, %arg2: memref<3x128x256xbf16, #tpu.memory_space<vmem>>, %arg3: memref<1x256xf32, #tpu.memory_space<vmem>>, %arg4: memref<3x128x256xbf16, #tpu.memory_space<vmem>>, %arg5: memref<1x256xf32, #tpu.memory_space<vmem>>, %arg6: memref<3x128x256xbf16, #tpu.memory_space<vmem>>, %arg7: memref<1x256xf32, #tpu.memory_space<vmem>>, %arg8: memref<2x128x128xbf16, #tpu.memory_space<vmem>>, %arg9: memref<1x128xf32, #tpu.memory_space<vmem>>, %arg10: memref<1x16x128xf32, #tpu.memory_space<vmem>>, %arg11: memref<256x256xf32, #tpu.memory_space<vmem>>, %arg12: memref<160x128xbf16, #tpu.memory_space<vmem>>, %arg13: memref<96x128xbf16, #tpu.memory_space<vmem>>) attributes {dimension_semantics = [#tpu.dimension_semantics<parallel>], iteration_bounds = array<i64: 1>, scalar_prefetch = 0 : i64, scratch_operands = 3 : i64, tpu.core_type = #tpu.core_type<tc>, window_params = [{transform_indices = @transform_0, window_bounds = array<i64: 1, 288, 128>}, {pipeline_mode = #tpu.pipeline_mode<synchronous>, transform_indices = @transform_1, window_bounds = array<i64: 3, 128, 256>}, {pipeline_mode = #tpu.pipeline_mode<synchronous>, transform_indices = @transform_2, window_bounds = array<i64: 1, 256>}, {pipeline_mode = #tpu.pipeline_mode<synchronous>, transform_indices = @transform_3, window_bounds = array<i64: 3, 128, 256>}, {pipeline_mode = #tpu.pipeline_mode<synchronous>, transform_indices = @transform_4, window_bounds = array<i64: 1, 256>}, {pipeline_mode = #tpu.pipeline_mode<synchronous>, transform_indices = @transform_5, window_bounds = array<i64: 3, 128, 256>}, {pipeline_mode = #tpu.pipeline_mode<synchronous>, transform_indices = @transform_6, window_bounds = array<i64: 1, 256>}, {pipeline_mode = #tpu.pipeline_mode<synchronous>, transform_indices = @transform_7, window_bounds = array<i64: 2, 128, 128>}, {pipeline_mode = #tpu.pipeline_mode<synchronous>, transform_indices = @transform_8, window_bounds = array<i64: 1, 128>}, {transform_indices = @transform_9, window_bounds = array<i64: 1, 16, 128>}]} {
    %cst = arith.constant 0.000000e+00 : bf16
    %0 = vector.broadcast %cst : bf16 to vector<16x128xbf16>
    %c0 = arith.constant 0 : index
    %c0_0 = arith.constant 0 : index
    %1 = vector.load %arg12[%c0, %c0_0] : memref<160x128xbf16, #tpu.memory_space<vmem>>, vector<16x128xbf16>
    tpu.vector_store %arg12[%c0, %c0_0], %0 {strides = array<i32>} : memref<160x128xbf16, #tpu.memory_space<vmem>>, vector<16x128xbf16>,
    %c144 = arith.constant 144 : index
    %c0_1 = arith.constant 0 : index
    %2 = vector.load %arg12[%c144, %c0_1] : memref<160x128xbf16, #tpu.memory_space<vmem>>, vector<16x128xbf16>
    tpu.vector_store %arg12[%c144, %c0_1], %0 {strides = array<i32>} : memref<160x128xbf16, #tpu.memory_space<vmem>>, vector<16x128xbf16>,
    %cst_2 = arith.constant 0.000000e+00 : bf16
    %3 = vector.broadcast %cst_2 : bf16 to vector<16x128xbf16>
    %c0_3 = arith.constant 0 : index
    %c0_4 = arith.constant 0 : index
    %4 = vector.load %arg13[%c0_3, %c0_4] : memref<96x128xbf16, #tpu.memory_space<vmem>>, vector<16x128xbf16>
    tpu.vector_store %arg13[%c0_3, %c0_4], %3 {strides = array<i32>} : memref<96x128xbf16, #tpu.memory_space<vmem>>, vector<16x128xbf16>,
    %c80 = arith.constant 80 : index
    %c0_5 = arith.constant 0 : index
    %5 = vector.load %arg13[%c80, %c0_5] : memref<96x128xbf16, #tpu.memory_space<vmem>>, vector<16x128xbf16>
    tpu.vector_store %arg13[%c80, %c0_5], %3 {strides = array<i32>} : memref<96x128xbf16, #tpu.memory_space<vmem>>, vector<16x128xbf16>,
    %c0_6 = arith.constant 0 : index
    %c0_7 = arith.constant 0 : index
    %6 = vector.load %arg3[%c0_6, %c0_7] : memref<1x256xf32, #tpu.memory_space<vmem>>, vector<1x256xf32>
    %c0_8 = arith.constant 0 : index
    %c0_9 = arith.constant 0 : index
    %c0_10 = arith.constant 0 : index
    %7 = vector.load %arg1[%c0_8, %c0_9, %c0_10] : memref<1x288x128xbf16, #tpu.memory_space<vmem>>, vector<1x256x128xbf16>
    %8 = vector.shape_cast %7 : vector<1x256x128xbf16> to vector<256x128xbf16>
    %c0_11 = arith.constant 0 : index
    %c0_12 = arith.constant 0 : index
    %c0_13 = arith.constant 0 : index
    %9 = vector.load %arg2[%c0_11, %c0_12, %c0_13] : memref<3x128x256xbf16, #tpu.memory_space<vmem>>, vector<1x128x256xbf16>
    %10 = vector.shape_cast %9 : vector<1x128x256xbf16> to vector<128x256xbf16>
    %cst_14 = arith.constant dense<0.000000e+00> : vector<256x256xf32>
    %11 = tpu.matmul %8, %10, %cst_14 {dimension_numbers = #tpu.dot_dimension_numbers<[1], [0], [0], [1], [0, 0, 1, 1], [], []>} : vector<256x128xbf16>, vector<128x256xbf16>, vector<256x256xf32> -> vector<256x256xf32>
    %c0_15 = arith.constant 0 : index
    %c0_16 = arith.constant 0 : index
    %12 = vector.load %arg11[%c0_15, %c0_16] : memref<256x256xf32, #tpu.memory_space<vmem>>, vector<256x256xf32>
    tpu.vector_store %arg11[%c0_15, %c0_16], %11 {strides = array<i32>} : memref<256x256xf32, #tpu.memory_space<vmem>>, vector<256x256xf32>,
    %c0_17 = arith.constant 0 : index
    %c16 = arith.constant 16 : index
    %c0_18 = arith.constant 0 : index
    %13 = vector.load %arg1[%c0_17, %c16, %c0_18] : memref<1x288x128xbf16, #tpu.memory_space<vmem>>, vector<1x256x128xbf16>
    %14 = vector.shape_cast %13 : vector<1x256x128xbf16> to vector<256x128xbf16>
    %c1 = arith.constant 1 : index
    %c0_19 = arith.constant 0 : index
    %c0_20 = arith.constant 0 : index
    %15 = vector.load %arg2[%c1, %c0_19, %c0_20] : memref<3x128x256xbf16, #tpu.memory_space<vmem>>, vector<1x128x256xbf16>
    %16 = vector.shape_cast %15 : vector<1x128x256xbf16> to vector<128x256xbf16>
    %cst_21 = arith.constant dense<0.000000e+00> : vector<256x256xf32>
    %17 = tpu.matmul %14, %16, %cst_21 {dimension_numbers = #tpu.dot_dimension_numbers<[1], [0], [0], [1], [0, 0, 1, 1], [], []>} : vector<256x128xbf16>, vector<128x256xbf16>, vector<256x256xf32> -> vector<256x256xf32>
    %c0_22 = arith.constant 0 : index
    %c0_23 = arith.constant 0 : index
    %18 = vector.load %arg11[%c0_22, %c0_23] : memref<256x256xf32, #tpu.memory_space<vmem>>, vector<256x256xf32>
    %19 = arith.addf %18, %17 : vector<256x256xf32>
    %c0_24 = arith.constant 0 : index
    %c0_25 = arith.constant 0 : index
    %20 = vector.load %arg11[%c0_24, %c0_25] : memref<256x256xf32, #tpu.memory_space<vmem>>, vector<256x256xf32>
    tpu.vector_store %arg11[%c0_24, %c0_25], %19 {strides = array<i32>} : memref<256x256xf32, #tpu.memory_space<vmem>>, vector<256x256xf32>,
    %c0_26 = arith.constant 0 : index
    %c32 = arith.constant 32 : index
    %c0_27 = arith.constant 0 : index
    %21 = vector.load %arg1[%c0_26, %c32, %c0_27] : memref<1x288x128xbf16, #tpu.memory_space<vmem>>, vector<1x256x128xbf16>
    %22 = vector.shape_cast %21 : vector<1x256x128xbf16> to vector<256x128xbf16>
    %c2 = arith.constant 2 : index
    %c0_28 = arith.constant 0 : index
    %c0_29 = arith.constant 0 : index
    %23 = vector.load %arg2[%c2, %c0_28, %c0_29] : memref<3x128x256xbf16, #tpu.memory_space<vmem>>, vector<1x128x256xbf16>
    %24 = vector.shape_cast %23 : vector<1x128x256xbf16> to vector<128x256xbf16>
    %cst_30 = arith.constant dense<0.000000e+00> : vector<256x256xf32>
    %25 = tpu.matmul %22, %24, %cst_30 {dimension_numbers = #tpu.dot_dimension_numbers<[1], [0], [0], [1], [0, 0, 1, 1], [], []>} : vector<256x128xbf16>, vector<128x256xbf16>, vector<256x256xf32> -> vector<256x256xf32>
    %c0_31 = arith.constant 0 : index
    %c0_32 = arith.constant 0 : index
    %26 = vector.load %arg11[%c0_31, %c0_32] : memref<256x256xf32, #tpu.memory_space<vmem>>, vector<256x256xf32>
    %27 = arith.addf %26, %25 : vector<256x256xf32>
    %c0_33 = arith.constant 0 : index
    %c0_34 = arith.constant 0 : index
    %28 = vector.load %arg11[%c0_33, %c0_34] : memref<256x256xf32, #tpu.memory_space<vmem>>, vector<256x256xf32>
    tpu.vector_store %arg11[%c0_33, %c0_34], %27 {strides = array<i32>} : memref<256x256xf32, #tpu.memory_space<vmem>>, vector<256x256xf32>,
    %c0_35 = arith.constant 0 : index
    %c0_36 = arith.constant 0 : index
    %29 = vector.load %arg11[%c0_35, %c0_36] : memref<256x256xf32, #tpu.memory_space<vmem>>, vector<32x256xf32>
    %30 = vector.broadcast %6 : vector<1x256xf32> to vector<32x256xf32>
    %31 = arith.addf %29, %30 : vector<32x256xf32>
    %cst_37 = arith.constant 0.000000e+00 : f32
    %32 = vector.broadcast %cst_37 : f32 to vector<32x256xf32>
    %33 = arith.maximumf %31, %32 : vector<32x256xf32>
    %34 = vector.extract_strided_slice %33 {offsets = [0, 0], sizes = [16, 256], strides = [1, 1]} : vector<32x256xf32> to vector<16x256xf32>
    %35 = vector.extract_strided_slice %33 {offsets = [16, 0], sizes = [16, 256], strides = [1, 1]} : vector<32x256xf32> to vector<16x256xf32>
    %36 = arith.maximumf %34, %35 : vector<16x256xf32>
    %37 = vector.extract_strided_slice %36 {offsets = [0, 0], sizes = [16, 128], strides = [1, 1]} : vector<16x256xf32> to vector<16x128xf32>
    %38 = vector.extract_strided_slice %36 {offsets = [0, 128], sizes = [16, 128], strides = [1, 1]} : vector<16x256xf32> to vector<16x128xf32>
    %39 = arith.maximumf %37, %38 : vector<16x128xf32>
    %40 = arith.truncf %39 : vector<16x128xf32> to vector<16x128xbf16>
    %c16_38 = arith.constant 16 : index
    %c0_39 = arith.constant 0 : index
    %41 = vector.load %arg12[%c16_38, %c0_39] : memref<160x128xbf16, #tpu.memory_space<vmem>>, vector<16x128xbf16>
    tpu.vector_store %arg12[%c16_38, %c0_39], %40 {strides = array<i32>} : memref<160x128xbf16, #tpu.memory_space<vmem>>, vector<16x128xbf16>,
    %c32_40 = arith.constant 32 : index
    %c0_41 = arith.constant 0 : index
    %42 = vector.load %arg11[%c32_40, %c0_41] : memref<256x256xf32, #tpu.memory_space<vmem>>, vector<32x256xf32>
    %43 = vector.broadcast %6 : vector<1x256xf32> to vector<32x256xf32>
    %44 = arith.addf %42, %43 : vector<32x256xf32>
    %cst_42 = arith.constant 0.000000e+00 : f32
    %45 = vector.broadcast %cst_42 : f32 to vector<32x256xf32>
    %46 = arith.maximumf %44, %45 : vector<32x256xf32>
    %47 = vector.extract_strided_slice %46 {offsets = [0, 0], sizes = [16, 256], strides = [1, 1]} : vector<32x256xf32> to vector<16x256xf32>
    %48 = vector.extract_strided_slice %46 {offsets = [16, 0], sizes = [16, 256], strides = [1, 1]} : vector<32x256xf32> to vector<16x256xf32>
    %49 = arith.maximumf %47, %48 : vector<16x256xf32>
    %50 = vector.extract_strided_slice %49 {offsets = [0, 0], sizes = [16, 128], strides = [1, 1]} : vector<16x256xf32> to vector<16x128xf32>
    %51 = vector.extract_strided_slice %49 {offsets = [0, 128], sizes = [16, 128], strides = [1, 1]} : vector<16x256xf32> to vector<16x128xf32>
    %52 = arith.maximumf %50, %51 : vector<16x128xf32>
    %53 = arith.truncf %52 : vector<16x128xf32> to vector<16x128xbf16>
    %c32_43 = arith.constant 32 : index
    %c0_44 = arith.constant 0 : index
    %54 = vector.load %arg12[%c32_43, %c0_44] : memref<160x128xbf16, #tpu.memory_space<vmem>>, vector<16x128xbf16>
    tpu.vector_store %arg12[%c32_43, %c0_44], %53 {strides = array<i32>} : memref<160x128xbf16, #tpu.memory_space<vmem>>, vector<16x128xbf16>,
    %c64 = arith.constant 64 : index
    %c0_45 = arith.constant 0 : index
    %55 = vector.load %arg11[%c64, %c0_45] : memref<256x256xf32, #tpu.memory_space<vmem>>, vector<32x256xf32>
    %56 = vector.broadcast %6 : vector<1x256xf32> to vector<32x256xf32>
    %57 = arith.addf %55, %56 : vector<32x256xf32>
    %cst_46 = arith.constant 0.000000e+00 : f32
    %58 = vector.broadcast %cst_46 : f32 to vector<32x256xf32>
    %59 = arith.maximumf %57, %58 : vector<32x256xf32>
    %60 = vector.extract_strided_slice %59 {offsets = [0, 0], sizes = [16, 256], strides = [1, 1]} : vector<32x256xf32> to vector<16x256xf32>
    %61 = vector.extract_strided_slice %59 {offsets = [16, 0], sizes = [16, 256], strides = [1, 1]} : vector<32x256xf32> to vector<16x256xf32>
    %62 = arith.maximumf %60, %61 : vector<16x256xf32>
    %63 = vector.extract_strided_slice %62 {offsets = [0, 0], sizes = [16, 128], strides = [1, 1]} : vector<16x256xf32> to vector<16x128xf32>
    %64 = vector.extract_strided_slice %62 {offsets = [0, 128], sizes = [16, 128], strides = [1, 1]} : vector<16x256xf32> to vector<16x128xf32>
    %65 = arith.maximumf %63, %64 : vector<16x128xf32>
    %66 = arith.truncf %65 : vector<16x128xf32> to vector<16x128xbf16>
    %c48 = arith.constant 48 : index
    %c0_47 = arith.constant 0 : index
    %67 = vector.load %arg12[%c48, %c0_47] : memref<160x128xbf16, #tpu.memory_space<vmem>>, vector<16x128xbf16>
    tpu.vector_store %arg12[%c48, %c0_47], %66 {strides = array<i32>} : memref<160x128xbf16, #tpu.memory_space<vmem>>, vector<16x128xbf16>,
    %c96 = arith.constant 96 : index
    %c0_48 = arith.constant 0 : index
    %68 = vector.load %arg11[%c96, %c0_48] : memref<256x256xf32, #tpu.memory_space<vmem>>, vector<32x256xf32>
    %69 = vector.broadcast %6 : vector<1x256xf32> to vector<32x256xf32>
    %70 = arith.addf %68, %69 : vector<32x256xf32>
    %cst_49 = arith.constant 0.000000e+00 : f32
    %71 = vector.broadcast %cst_49 : f32 to vector<32x256xf32>
    %72 = arith.maximumf %70, %71 : vector<32x256xf32>
    %73 = vector.extract_strided_slice %72 {offsets = [0, 0], sizes = [16, 256], strides = [1, 1]} : vector<32x256xf32> to vector<16x256xf32>
    %74 = vector.extract_strided_slice %72 {offsets = [16, 0], sizes = [16, 256], strides = [1, 1]} : vector<32x256xf32> to vector<16x256xf32>
    %75 = arith.maximumf %73, %74 : vector<16x256xf32>
    %76 = vector.extract_strided_slice %75 {offsets = [0, 0], sizes = [16, 128], strides = [1, 1]} : vector<16x256xf32> to vector<16x128xf32>
    %77 = vector.extract_strided_slice %75 {offsets = [0, 128], sizes = [16, 128], strides = [1, 1]} : vector<16x256xf32> to vector<16x128xf32>
    %78 = arith.maximumf %76, %77 : vector<16x128xf32>
    %79 = arith.truncf %78 : vector<16x128xf32> to vector<16x128xbf16>
    %c64_50 = arith.constant 64 : index
    %c0_51 = arith.constant 0 : index
    %80 = vector.load %arg12[%c64_50, %c0_51] : memref<160x128xbf16, #tpu.memory_space<vmem>>, vector<16x128xbf16>
    tpu.vector_store %arg12[%c64_50, %c0_51], %79 {strides = array<i32>} : memref<160x128xbf16, #tpu.memory_space<vmem>>, vector<16x128xbf16>,
    %c128 = arith.constant 128 : index
    %c0_52 = arith.constant 0 : index
    %81 = vector.load %arg11[%c128, %c0_52] : memref<256x256xf32, #tpu.memory_space<vmem>>, vector<32x256xf32>
    %82 = vector.broadcast %6 : vector<1x256xf32> to vector<32x256xf32>
    %83 = arith.addf %81, %82 : vector<32x256xf32>
    %cst_53 = arith.constant 0.000000e+00 : f32
    %84 = vector.broadcast %cst_53 : f32 to vector<32x256xf32>
    %85 = arith.maximumf %83, %84 : vector<32x256xf32>
    %86 = vector.extract_strided_slice %85 {offsets = [0, 0], sizes = [16, 256], strides = [1, 1]} : vector<32x256xf32> to vector<16x256xf32>
    %87 = vector.extract_strided_slice %85 {offsets = [16, 0], sizes = [16, 256], strides = [1, 1]} : vector<32x256xf32> to vector<16x256xf32>
    %88 = arith.maximumf %86, %87 : vector<16x256xf32>
    %89 = vector.extract_strided_slice %88 {offsets = [0, 0], sizes = [16, 128], strides = [1, 1]} : vector<16x256xf32> to vector<16x128xf32>
    %90 = vector.extract_strided_slice %88 {offsets = [0, 128], sizes = [16, 128], strides = [1, 1]} : vector<16x256xf32> to vector<16x128xf32>
    %91 = arith.maximumf %89, %90 : vector<16x128xf32>
    %92 = arith.truncf %91 : vector<16x128xf32> to vector<16x128xbf16>
    %c80_54 = arith.constant 80 : index
    %c0_55 = arith.constant 0 : index
    %93 = vector.load %arg12[%c80_54, %c0_55] : memref<160x128xbf16, #tpu.memory_space<vmem>>, vector<16x128xbf16>
    tpu.vector_store %arg12[%c80_54, %c0_55], %92 {strides = array<i32>} : memref<160x128xbf16, #tpu.memory_space<vmem>>, vector<16x128xbf16>,
    %c160 = arith.constant 160 : index
    %c0_56 = arith.constant 0 : index
    %94 = vector.load %arg11[%c160, %c0_56] : memref<256x256xf32, #tpu.memory_space<vmem>>, vector<32x256xf32>
    %95 = vector.broadcast %6 : vector<1x256xf32> to vector<32x256xf32>
    %96 = arith.addf %94, %95 : vector<32x256xf32>
    %cst_57 = arith.constant 0.000000e+00 : f32
    %97 = vector.broadcast %cst_57 : f32 to vector<32x256xf32>
    %98 = arith.maximumf %96, %97 : vector<32x256xf32>
    %99 = vector.extract_strided_slice %98 {offsets = [0, 0], sizes = [16, 256], strides = [1, 1]} : vector<32x256xf32> to vector<16x256xf32>
    %100 = vector.extract_strided_slice %98 {offsets = [16, 0], sizes = [16, 256], strides = [1, 1]} : vector<32x256xf32> to vector<16x256xf32>
    %101 = arith.maximumf %99, %100 : vector<16x256xf32>
    %102 = vector.extract_strided_slice %101 {offsets = [0, 0], sizes = [16, 128], strides = [1, 1]} : vector<16x256xf32> to vector<16x128xf32>
    %103 = vector.extract_strided_slice %101 {offsets = [0, 128], sizes = [16, 128], strides = [1, 1]} : vector<16x256xf32> to vector<16x128xf32>
    %104 = arith.maximumf %102, %103 : vector<16x128xf32>
    %105 = arith.truncf %104 : vector<16x128xf32> to vector<16x128xbf16>
    %c96_58 = arith.constant 96 : index
    %c0_59 = arith.constant 0 : index
    %106 = vector.load %arg12[%c96_58, %c0_59] : memref<160x128xbf16, #tpu.memory_space<vmem>>, vector<16x128xbf16>
    tpu.vector_store %arg12[%c96_58, %c0_59], %105 {strides = array<i32>} : memref<160x128xbf16, #tpu.memory_space<vmem>>, vector<16x128xbf16>,
    %c192 = arith.constant 192 : index
    %c0_60 = arith.constant 0 : index
    %107 = vector.load %arg11[%c192, %c0_60] : memref<256x256xf32, #tpu.memory_space<vmem>>, vector<32x256xf32>
    %108 = vector.broadcast %6 : vector<1x256xf32> to vector<32x256xf32>
    %109 = arith.addf %107, %108 : vector<32x256xf32>
    %cst_61 = arith.constant 0.000000e+00 : f32
    %110 = vector.broadcast %cst_61 : f32 to vector<32x256xf32>
    %111 = arith.maximumf %109, %110 : vector<32x256xf32>
    %112 = vector.extract_strided_slice %111 {offsets = [0, 0], sizes = [16, 256], strides = [1, 1]} : vector<32x256xf32> to vector<16x256xf32>
    %113 = vector.extract_strided_slice %111 {offsets = [16, 0], sizes = [16, 256], strides = [1, 1]} : vector<32x256xf32> to vector<16x256xf32>
    %114 = arith.maximumf %112, %113 : vector<16x256xf32>
    %115 = vector.extract_strided_slice %114 {offsets = [0, 0], sizes = [16, 128], strides = [1, 1]} : vector<16x256xf32> to vector<16x128xf32>
    %116 = vector.extract_strided_slice %114 {offsets = [0, 128], sizes = [16, 128], strides = [1, 1]} : vector<16x256xf32> to vector<16x128xf32>
    %117 = arith.maximumf %115, %116 : vector<16x128xf32>
    %118 = arith.truncf %117 : vector<16x128xf32> to vector<16x128xbf16>
    %c112 = arith.constant 112 : index
    %c0_62 = arith.constant 0 : index
    %119 = vector.load %arg12[%c112, %c0_62] : memref<160x128xbf16, #tpu.memory_space<vmem>>, vector<16x128xbf16>
    tpu.vector_store %arg12[%c112, %c0_62], %118 {strides = array<i32>} : memref<160x128xbf16, #tpu.memory_space<vmem>>, vector<16x128xbf16>,
    %c224 = arith.constant 224 : index
    %c0_63 = arith.constant 0 : index
    %120 = vector.load %arg11[%c224, %c0_63] : memref<256x256xf32, #tpu.memory_space<vmem>>, vector<32x256xf32>
    %121 = vector.broadcast %6 : vector<1x256xf32> to vector<32x256xf32>
    %122 = arith.addf %120, %121 : vector<32x256xf32>
    %cst_64 = arith.constant 0.000000e+00 : f32
    %123 = vector.broadcast %cst_64 : f32 to vector<32x256xf32>
    %124 = arith.maximumf %122, %123 : vector<32x256xf32>
    %125 = vector.extract_strided_slice %124 {offsets = [0, 0], sizes = [16, 256], strides = [1, 1]} : vector<32x256xf32> to vector<16x256xf32>
    %126 = vector.extract_strided_slice %124 {offsets = [16, 0], sizes = [16, 256], strides = [1, 1]} : vector<32x256xf32> to vector<16x256xf32>
    %127 = arith.maximumf %125, %126 : vector<16x256xf32>
    %128 = vector.extract_strided_slice %127 {offsets = [0, 0], sizes = [16, 128], strides = [1, 1]} : vector<16x256xf32> to vector<16x128xf32>
    %129 = vector.extract_strided_slice %127 {offsets = [0, 128], sizes = [16, 128], strides = [1, 1]} : vector<16x256xf32> to vector<16x128xf32>
    %130 = arith.maximumf %128, %129 : vector<16x128xf32>
    %131 = arith.truncf %130 : vector<16x128xf32> to vector<16x128xbf16>
    %c128_65 = arith.constant 128 : index
    %c0_66 = arith.constant 0 : index
    %132 = vector.load %arg12[%c128_65, %c0_66] : memref<160x128xbf16, #tpu.memory_space<vmem>>, vector<16x128xbf16>
    tpu.vector_store %arg12[%c128_65, %c0_66], %131 {strides = array<i32>} : memref<160x128xbf16, #tpu.memory_space<vmem>>, vector<16x128xbf16>,
    %c0_67 = arith.constant 0 : index
    %c0_68 = arith.constant 0 : index
    %133 = vector.load %arg5[%c0_67, %c0_68] : memref<1x256xf32, #tpu.memory_space<vmem>>, vector<1x256xf32>
    %c0_69 = arith.constant 0 : index
    %c0_70 = arith.constant 0 : index
    %134 = vector.load %arg12[%c0_69, %c0_70] : memref<160x128xbf16, #tpu.memory_space<vmem>>, vector<128x128xbf16>
    %c0_71 = arith.constant 0 : index
    %c0_72 = arith.constant 0 : index
    %c0_73 = arith.constant 0 : index
    %135 = vector.load %arg4[%c0_71, %c0_72, %c0_73] : memref<3x128x256xbf16, #tpu.memory_space<vmem>>, vector<1x128x256xbf16>
    %136 = vector.shape_cast %135 : vector<1x128x256xbf16> to vector<128x256xbf16>
    %cst_74 = arith.constant dense<0.000000e+00> : vector<128x256xf32>
    %137 = tpu.matmul %134, %136, %cst_74 {dimension_numbers = #tpu.dot_dimension_numbers<[1], [0], [0], [1], [0, 0, 1, 1], [], []>} : vector<128x128xbf16>, vector<128x256xbf16>, vector<128x256xf32> -> vector<128x256xf32>
    %c0_75 = arith.constant 0 : index
    %c0_76 = arith.constant 0 : index
    %138 = vector.load %arg11[%c0_75, %c0_76] : memref<256x256xf32, #tpu.memory_space<vmem>>, vector<128x256xf32>
    tpu.vector_store %arg11[%c0_75, %c0_76], %137 {strides = array<i32>} : memref<256x256xf32, #tpu.memory_space<vmem>>, vector<128x256xf32>,
    %c16_77 = arith.constant 16 : index
    %c0_78 = arith.constant 0 : index
    %139 = vector.load %arg12[%c16_77, %c0_78] : memref<160x128xbf16, #tpu.memory_space<vmem>>, vector<128x128xbf16>
    %c1_79 = arith.constant 1 : index
    %c0_80 = arith.constant 0 : index
    %c0_81 = arith.constant 0 : index
    %140 = vector.load %arg4[%c1_79, %c0_80, %c0_81] : memref<3x128x256xbf16, #tpu.memory_space<vmem>>, vector<1x128x256xbf16>
    %141 = vector.shape_cast %140 : vector<1x128x256xbf16> to vector<128x256xbf16>
    %cst_82 = arith.constant dense<0.000000e+00> : vector<128x256xf32>
    %142 = tpu.matmul %139, %141, %cst_82 {dimension_numbers = #tpu.dot_dimension_numbers<[1], [0], [0], [1], [0, 0, 1, 1], [], []>} : vector<128x128xbf16>, vector<128x256xbf16>, vector<128x256xf32> -> vector<128x256xf32>
    %c0_83 = arith.constant 0 : index
    %c0_84 = arith.constant 0 : index
    %143 = vector.load %arg11[%c0_83, %c0_84] : memref<256x256xf32, #tpu.memory_space<vmem>>, vector<128x256xf32>
    %144 = arith.addf %143, %142 : vector<128x256xf32>
    %c0_85 = arith.constant 0 : index
    %c0_86 = arith.constant 0 : index
    %145 = vector.load %arg11[%c0_85, %c0_86] : memref<256x256xf32, #tpu.memory_space<vmem>>, vector<128x256xf32>
    tpu.vector_store %arg11[%c0_85, %c0_86], %144 {strides = array<i32>} : memref<256x256xf32, #tpu.memory_space<vmem>>, vector<128x256xf32>,
    %c32_87 = arith.constant 32 : index
    %c0_88 = arith.constant 0 : index
    %146 = vector.load %arg12[%c32_87, %c0_88] : memref<160x128xbf16, #tpu.memory_space<vmem>>, vector<128x128xbf16>
    %c2_89 = arith.constant 2 : index
    %c0_90 = arith.constant 0 : index
    %c0_91 = arith.constant 0 : index
    %147 = vector.load %arg4[%c2_89, %c0_90, %c0_91] : memref<3x128x256xbf16, #tpu.memory_space<vmem>>, vector<1x128x256xbf16>
    %148 = vector.shape_cast %147 : vector<1x128x256xbf16> to vector<128x256xbf16>
    %cst_92 = arith.constant dense<0.000000e+00> : vector<128x256xf32>
    %149 = tpu.matmul %146, %148, %cst_92 {dimension_numbers = #tpu.dot_dimension_numbers<[1], [0], [0], [1], [0, 0, 1, 1], [], []>} : vector<128x128xbf16>, vector<128x256xbf16>, vector<128x256xf32> -> vector<128x256xf32>
    %c0_93 = arith.constant 0 : index
    %c0_94 = arith.constant 0 : index
    %150 = vector.load %arg11[%c0_93, %c0_94] : memref<256x256xf32, #tpu.memory_space<vmem>>, vector<128x256xf32>
    %151 = arith.addf %150, %149 : vector<128x256xf32>
    %c0_95 = arith.constant 0 : index
    %c0_96 = arith.constant 0 : index
    %152 = vector.load %arg11[%c0_95, %c0_96] : memref<256x256xf32, #tpu.memory_space<vmem>>, vector<128x256xf32>
    tpu.vector_store %arg11[%c0_95, %c0_96], %151 {strides = array<i32>} : memref<256x256xf32, #tpu.memory_space<vmem>>, vector<128x256xf32>,
    %c0_97 = arith.constant 0 : index
    %c0_98 = arith.constant 0 : index
    %153 = vector.load %arg11[%c0_97, %c0_98] : memref<256x256xf32, #tpu.memory_space<vmem>>, vector<32x256xf32>
    %154 = vector.broadcast %133 : vector<1x256xf32> to vector<32x256xf32>
    %155 = arith.addf %153, %154 : vector<32x256xf32>
    %cst_99 = arith.constant 0.000000e+00 : f32
    %156 = vector.broadcast %cst_99 : f32 to vector<32x256xf32>
    %157 = arith.maximumf %155, %156 : vector<32x256xf32>
    %158 = vector.extract_strided_slice %157 {offsets = [0, 0], sizes = [16, 256], strides = [1, 1]} : vector<32x256xf32> to vector<16x256xf32>
    %159 = vector.extract_strided_slice %157 {offsets = [16, 0], sizes = [16, 256], strides = [1, 1]} : vector<32x256xf32> to vector<16x256xf32>
    %160 = arith.maximumf %158, %159 : vector<16x256xf32>
    %161 = vector.extract_strided_slice %160 {offsets = [0, 0], sizes = [16, 128], strides = [1, 1]} : vector<16x256xf32> to vector<16x128xf32>
    %162 = vector.extract_strided_slice %160 {offsets = [0, 128], sizes = [16, 128], strides = [1, 1]} : vector<16x256xf32> to vector<16x128xf32>
    %163 = arith.maximumf %161, %162 : vector<16x128xf32>
    %164 = arith.truncf %163 : vector<16x128xf32> to vector<16x128xbf16>
    %c16_100 = arith.constant 16 : index
    %c0_101 = arith.constant 0 : index
    %165 = vector.load %arg13[%c16_100, %c0_101] : memref<96x128xbf16, #tpu.memory_space<vmem>>, vector<16x128xbf16>
    tpu.vector_store %arg13[%c16_100, %c0_101], %164 {strides = array<i32>} : memref<96x128xbf16, #tpu.memory_space<vmem>>, vector<16x128xbf16>,
    %c32_102 = arith.constant 32 : index
    %c0_103 = arith.constant 0 : index
    %166 = vector.load %arg11[%c32_102, %c0_103] : memref<256x256xf32, #tpu.memory_space<vmem>>, vector<32x256xf32>
    %167 = vector.broadcast %133 : vector<1x256xf32> to vector<32x256xf32>
    %168 = arith.addf %166, %167 : vector<32x256xf32>
    %cst_104 = arith.constant 0.000000e+00 : f32
    %169 = vector.broadcast %cst_104 : f32 to vector<32x256xf32>
    %170 = arith.maximumf %168, %169 : vector<32x256xf32>
    %171 = vector.extract_strided_slice %170 {offsets = [0, 0], sizes = [16, 256], strides = [1, 1]} : vector<32x256xf32> to vector<16x256xf32>
    %172 = vector.extract_strided_slice %170 {offsets = [16, 0], sizes = [16, 256], strides = [1, 1]} : vector<32x256xf32> to vector<16x256xf32>
    %173 = arith.maximumf %171, %172 : vector<16x256xf32>
    %174 = vector.extract_strided_slice %173 {offsets = [0, 0], sizes = [16, 128], strides = [1, 1]} : vector<16x256xf32> to vector<16x128xf32>
    %175 = vector.extract_strided_slice %173 {offsets = [0, 128], sizes = [16, 128], strides = [1, 1]} : vector<16x256xf32> to vector<16x128xf32>
    %176 = arith.maximumf %174, %175 : vector<16x128xf32>
    %177 = arith.truncf %176 : vector<16x128xf32> to vector<16x128xbf16>
    %c32_105 = arith.constant 32 : index
    %c0_106 = arith.constant 0 : index
    %178 = vector.load %arg13[%c32_105, %c0_106] : memref<96x128xbf16, #tpu.memory_space<vmem>>, vector<16x128xbf16>
    tpu.vector_store %arg13[%c32_105, %c0_106], %177 {strides = array<i32>} : memref<96x128xbf16, #tpu.memory_space<vmem>>, vector<16x128xbf16>,
    %c64_107 = arith.constant 64 : index
    %c0_108 = arith.constant 0 : index
    %179 = vector.load %arg11[%c64_107, %c0_108] : memref<256x256xf32, #tpu.memory_space<vmem>>, vector<32x256xf32>
    %180 = vector.broadcast %133 : vector<1x256xf32> to vector<32x256xf32>
    %181 = arith.addf %179, %180 : vector<32x256xf32>
    %cst_109 = arith.constant 0.000000e+00 : f32
    %182 = vector.broadcast %cst_109 : f32 to vector<32x256xf32>
    %183 = arith.maximumf %181, %182 : vector<32x256xf32>
    %184 = vector.extract_strided_slice %183 {offsets = [0, 0], sizes = [16, 256], strides = [1, 1]} : vector<32x256xf32> to vector<16x256xf32>
    %185 = vector.extract_strided_slice %183 {offsets = [16, 0], sizes = [16, 256], strides = [1, 1]} : vector<32x256xf32> to vector<16x256xf32>
    %186 = arith.maximumf %184, %185 : vector<16x256xf32>
    %187 = vector.extract_strided_slice %186 {offsets = [0, 0], sizes = [16, 128], strides = [1, 1]} : vector<16x256xf32> to vector<16x128xf32>
    %188 = vector.extract_strided_slice %186 {offsets = [0, 128], sizes = [16, 128], strides = [1, 1]} : vector<16x256xf32> to vector<16x128xf32>
    %189 = arith.maximumf %187, %188 : vector<16x128xf32>
    %190 = arith.truncf %189 : vector<16x128xf32> to vector<16x128xbf16>
    %c48_110 = arith.constant 48 : index
    %c0_111 = arith.constant 0 : index
    %191 = vector.load %arg13[%c48_110, %c0_111] : memref<96x128xbf16, #tpu.memory_space<vmem>>, vector<16x128xbf16>
    tpu.vector_store %arg13[%c48_110, %c0_111], %190 {strides = array<i32>} : memref<96x128xbf16, #tpu.memory_space<vmem>>, vector<16x128xbf16>,
    %c96_112 = arith.constant 96 : index
    %c0_113 = arith.constant 0 : index
    %192 = vector.load %arg11[%c96_112, %c0_113] : memref<256x256xf32, #tpu.memory_space<vmem>>, vector<32x256xf32>
    %193 = vector.broadcast %133 : vector<1x256xf32> to vector<32x256xf32>
    %194 = arith.addf %192, %193 : vector<32x256xf32>
    %cst_114 = arith.constant 0.000000e+00 : f32
    %195 = vector.broadcast %cst_114 : f32 to vector<32x256xf32>
    %196 = arith.maximumf %194, %195 : vector<32x256xf32>
    %197 = vector.extract_strided_slice %196 {offsets = [0, 0], sizes = [16, 256], strides = [1, 1]} : vector<32x256xf32> to vector<16x256xf32>
    %198 = vector.extract_strided_slice %196 {offsets = [16, 0], sizes = [16, 256], strides = [1, 1]} : vector<32x256xf32> to vector<16x256xf32>
    %199 = arith.maximumf %197, %198 : vector<16x256xf32>
    %200 = vector.extract_strided_slice %199 {offsets = [0, 0], sizes = [16, 128], strides = [1, 1]} : vector<16x256xf32> to vector<16x128xf32>
    %201 = vector.extract_strided_slice %199 {offsets = [0, 128], sizes = [16, 128], strides = [1, 1]} : vector<16x256xf32> to vector<16x128xf32>
    %202 = arith.maximumf %200, %201 : vector<16x128xf32>
    %203 = arith.truncf %202 : vector<16x128xf32> to vector<16x128xbf16>
    %c64_115 = arith.constant 64 : index
    %c0_116 = arith.constant 0 : index
    %204 = vector.load %arg13[%c64_115, %c0_116] : memref<96x128xbf16, #tpu.memory_space<vmem>>, vector<16x128xbf16>
    tpu.vector_store %arg13[%c64_115, %c0_116], %203 {strides = array<i32>} : memref<96x128xbf16, #tpu.memory_space<vmem>>, vector<16x128xbf16>,
    %c0_117 = arith.constant 0 : index
    %c0_118 = arith.constant 0 : index
    %205 = vector.load %arg7[%c0_117, %c0_118] : memref<1x256xf32, #tpu.memory_space<vmem>>, vector<1x256xf32>
    %c0_119 = arith.constant 0 : index
    %c0_120 = arith.constant 0 : index
    %206 = vector.load %arg13[%c0_119, %c0_120] : memref<96x128xbf16, #tpu.memory_space<vmem>>, vector<64x128xbf16>
    %c0_121 = arith.constant 0 : index
    %c0_122 = arith.constant 0 : index
    %c0_123 = arith.constant 0 : index
    %207 = vector.load %arg6[%c0_121, %c0_122, %c0_123] : memref<3x128x256xbf16, #tpu.memory_space<vmem>>, vector<1x128x256xbf16>
    %208 = vector.shape_cast %207 : vector<1x128x256xbf16> to vector<128x256xbf16>
    %cst_124 = arith.constant dense<0.000000e+00> : vector<64x256xf32>
    %209 = tpu.matmul %206, %208, %cst_124 {dimension_numbers = #tpu.dot_dimension_numbers<[1], [0], [0], [1], [0, 0, 1, 1], [], []>} : vector<64x128xbf16>, vector<128x256xbf16>, vector<64x256xf32> -> vector<64x256xf32>
    %c0_125 = arith.constant 0 : index
    %c0_126 = arith.constant 0 : index
    %210 = vector.load %arg11[%c0_125, %c0_126] : memref<256x256xf32, #tpu.memory_space<vmem>>, vector<64x256xf32>
    tpu.vector_store %arg11[%c0_125, %c0_126], %209 {strides = array<i32>} : memref<256x256xf32, #tpu.memory_space<vmem>>, vector<64x256xf32>,
    %c16_127 = arith.constant 16 : index
    %c0_128 = arith.constant 0 : index
    %211 = vector.load %arg13[%c16_127, %c0_128] : memref<96x128xbf16, #tpu.memory_space<vmem>>, vector<64x128xbf16>
    %c1_129 = arith.constant 1 : index
    %c0_130 = arith.constant 0 : index
    %c0_131 = arith.constant 0 : index
    %212 = vector.load %arg6[%c1_129, %c0_130, %c0_131] : memref<3x128x256xbf16, #tpu.memory_space<vmem>>, vector<1x128x256xbf16>
    %213 = vector.shape_cast %212 : vector<1x128x256xbf16> to vector<128x256xbf16>
    %cst_132 = arith.constant dense<0.000000e+00> : vector<64x256xf32>
    %214 = tpu.matmul %211, %213, %cst_132 {dimension_numbers = #tpu.dot_dimension_numbers<[1], [0], [0], [1], [0, 0, 1, 1], [], []>} : vector<64x128xbf16>, vector<128x256xbf16>, vector<64x256xf32> -> vector<64x256xf32>
    %c0_133 = arith.constant 0 : index
    %c0_134 = arith.constant 0 : index
    %215 = vector.load %arg11[%c0_133, %c0_134] : memref<256x256xf32, #tpu.memory_space<vmem>>, vector<64x256xf32>
    %216 = arith.addf %215, %214 : vector<64x256xf32>
    %c0_135 = arith.constant 0 : index
    %c0_136 = arith.constant 0 : index
    %217 = vector.load %arg11[%c0_135, %c0_136] : memref<256x256xf32, #tpu.memory_space<vmem>>, vector<64x256xf32>
    tpu.vector_store %arg11[%c0_135, %c0_136], %216 {strides = array<i32>} : memref<256x256xf32, #tpu.memory_space<vmem>>, vector<64x256xf32>,
    %c32_137 = arith.constant 32 : index
    %c0_138 = arith.constant 0 : index
    %218 = vector.load %arg13[%c32_137, %c0_138] : memref<96x128xbf16, #tpu.memory_space<vmem>>, vector<64x128xbf16>
    %c2_139 = arith.constant 2 : index
    %c0_140 = arith.constant 0 : index
    %c0_141 = arith.constant 0 : index
    %219 = vector.load %arg6[%c2_139, %c0_140, %c0_141] : memref<3x128x256xbf16, #tpu.memory_space<vmem>>, vector<1x128x256xbf16>
    %220 = vector.shape_cast %219 : vector<1x128x256xbf16> to vector<128x256xbf16>
    %cst_142 = arith.constant dense<0.000000e+00> : vector<64x256xf32>
    %221 = tpu.matmul %218, %220, %cst_142 {dimension_numbers = #tpu.dot_dimension_numbers<[1], [0], [0], [1], [0, 0, 1, 1], [], []>} : vector<64x128xbf16>, vector<128x256xbf16>, vector<64x256xf32> -> vector<64x256xf32>
    %c0_143 = arith.constant 0 : index
    %c0_144 = arith.constant 0 : index
    %222 = vector.load %arg11[%c0_143, %c0_144] : memref<256x256xf32, #tpu.memory_space<vmem>>, vector<64x256xf32>
    %223 = arith.addf %222, %221 : vector<64x256xf32>
    %c0_145 = arith.constant 0 : index
    %c0_146 = arith.constant 0 : index
    %224 = vector.load %arg11[%c0_145, %c0_146] : memref<256x256xf32, #tpu.memory_space<vmem>>, vector<64x256xf32>
    tpu.vector_store %arg11[%c0_145, %c0_146], %223 {strides = array<i32>} : memref<256x256xf32, #tpu.memory_space<vmem>>, vector<64x256xf32>,
    %c0_147 = arith.constant 0 : index
    %c0_148 = arith.constant 0 : index
    %225 = vector.load %arg11[%c0_147, %c0_148] : memref<256x256xf32, #tpu.memory_space<vmem>>, vector<32x256xf32>
    %226 = vector.broadcast %205 : vector<1x256xf32> to vector<32x256xf32>
    %227 = arith.addf %225, %226 : vector<32x256xf32>
    %cst_149 = arith.constant 0.000000e+00 : f32
    %228 = vector.broadcast %cst_149 : f32 to vector<32x256xf32>
    %229 = arith.maximumf %227, %228 : vector<32x256xf32>
    %230 = vector.extract_strided_slice %229 {offsets = [0, 0], sizes = [16, 256], strides = [1, 1]} : vector<32x256xf32> to vector<16x256xf32>
    %231 = vector.extract_strided_slice %229 {offsets = [16, 0], sizes = [16, 256], strides = [1, 1]} : vector<32x256xf32> to vector<16x256xf32>
    %232 = arith.maximumf %230, %231 : vector<16x256xf32>
    %233 = vector.extract_strided_slice %232 {offsets = [0, 0], sizes = [16, 128], strides = [1, 1]} : vector<16x256xf32> to vector<16x128xf32>
    %234 = vector.extract_strided_slice %232 {offsets = [0, 128], sizes = [16, 128], strides = [1, 1]} : vector<16x256xf32> to vector<16x128xf32>
    %235 = arith.maximumf %233, %234 : vector<16x128xf32>
    %236 = arith.truncf %235 : vector<16x128xf32> to vector<16x128xbf16>
    %c0_150 = arith.constant 0 : index
    %c0_151 = arith.constant 0 : index
    %c0_152 = arith.constant 0 : index
    %237 = vector.load %arg8[%c0_150, %c0_151, %c0_152] : memref<2x128x128xbf16, #tpu.memory_space<vmem>>, vector<1x128x128xbf16>
    %238 = vector.shape_cast %237 : vector<1x128x128xbf16> to vector<128x128xbf16>
    %cst_153 = arith.constant dense<0.000000e+00> : vector<16x128xf32>
    %239 = tpu.matmul %236, %238, %cst_153 {dimension_numbers = #tpu.dot_dimension_numbers<[1], [0], [0], [1], [0, 0, 1, 1], [], []>} : vector<16x128xbf16>, vector<128x128xbf16>, vector<16x128xf32> -> vector<16x128xf32>
    %c32_154 = arith.constant 32 : index
    %c0_155 = arith.constant 0 : index
    %240 = vector.load %arg11[%c32_154, %c0_155] : memref<256x256xf32, #tpu.memory_space<vmem>>, vector<32x256xf32>
    %241 = vector.broadcast %205 : vector<1x256xf32> to vector<32x256xf32>
    %242 = arith.addf %240, %241 : vector<32x256xf32>
    %cst_156 = arith.constant 0.000000e+00 : f32
    %243 = vector.broadcast %cst_156 : f32 to vector<32x256xf32>
    %244 = arith.maximumf %242, %243 : vector<32x256xf32>
    %245 = vector.extract_strided_slice %244 {offsets = [0, 0], sizes = [16, 256], strides = [1, 1]} : vector<32x256xf32> to vector<16x256xf32>
    %246 = vector.extract_strided_slice %244 {offsets = [16, 0], sizes = [16, 256], strides = [1, 1]} : vector<32x256xf32> to vector<16x256xf32>
    %247 = arith.maximumf %245, %246 : vector<16x256xf32>
    %248 = vector.extract_strided_slice %247 {offsets = [0, 0], sizes = [16, 128], strides = [1, 1]} : vector<16x256xf32> to vector<16x128xf32>
    %249 = vector.extract_strided_slice %247 {offsets = [0, 128], sizes = [16, 128], strides = [1, 1]} : vector<16x256xf32> to vector<16x128xf32>
    %250 = arith.maximumf %248, %249 : vector<16x128xf32>
    %251 = arith.truncf %250 : vector<16x128xf32> to vector<16x128xbf16>
    %c1_157 = arith.constant 1 : index
    %c0_158 = arith.constant 0 : index
    %c0_159 = arith.constant 0 : index
    %252 = vector.load %arg8[%c1_157, %c0_158, %c0_159] : memref<2x128x128xbf16, #tpu.memory_space<vmem>>, vector<1x128x128xbf16>
    %253 = vector.shape_cast %252 : vector<1x128x128xbf16> to vector<128x128xbf16>
    %cst_160 = arith.constant dense<0.000000e+00> : vector<16x128xf32>
    %254 = tpu.matmul %251, %253, %cst_160 {dimension_numbers = #tpu.dot_dimension_numbers<[1], [0], [0], [1], [0, 0, 1, 1], [], []>} : vector<16x128xbf16>, vector<128x128xbf16>, vector<16x128xf32> -> vector<16x128xf32>
    %255 = arith.addf %239, %254 : vector<16x128xf32>
    %c0_161 = arith.constant 0 : index
    %c0_162 = arith.constant 0 : index
    %256 = vector.load %arg9[%c0_161, %c0_162] : memref<1x128xf32, #tpu.memory_space<vmem>>, vector<1x128xf32>
    %257 = vector.broadcast %256 : vector<1x128xf32> to vector<16x128xf32>
    %258 = arith.addf %255, %257 : vector<16x128xf32>
    %c0_163 = arith.constant 0 : index
    %c0_164 = arith.constant 0 : index
    %c0_165 = arith.constant 0 : index
    %259 = vector.load %arg10[%c0_163, %c0_164, %c0_165] : memref<1x16x128xf32, #tpu.memory_space<vmem>>, vector<1x16x128xf32>
    %260 = vector.shape_cast %259 : vector<1x16x128xf32> to vector<16x128xf32>
    %261 = vector.shape_cast %258 : vector<16x128xf32> to vector<1x16x128xf32>
    tpu.vector_store %arg10[%c0_163, %c0_164, %c0_165], %261 {strides = array<i32>} : memref<1x16x128xf32, #tpu.memory_space<vmem>>, vector<1x16x128xf32>,
    return
  }
  func.func @transform_0(%arg0: i32) -> (i32, i32, i32) {
    %c0_i32 = arith.constant 0 : i32
    %c0_i32_0 = arith.constant 0 : i32
    %c0_i32_1 = arith.constant 0 : i32
    return %arg0, %c0_i32, %c0_i32_0 : i32, i32, i32
  }
  func.func @transform_1(%arg0: i32) -> (i32, i32, i32) {
    %c0_i32 = arith.constant 0 : i32
    %c0_i32_0 = arith.constant 0 : i32
    %c0_i32_1 = arith.constant 0 : i32
    %c0_i32_2 = arith.constant 0 : i32
    return %c0_i32, %c0_i32_0, %c0_i32_1 : i32, i32, i32
  }
  func.func @transform_2(%arg0: i32) -> (i32, i32) {
    %c0_i32 = arith.constant 0 : i32
    %c0_i32_0 = arith.constant 0 : i32
    %c0_i32_1 = arith.constant 0 : i32
    return %c0_i32, %c0_i32_0 : i32, i32
  }
  func.func @transform_3(%arg0: i32) -> (i32, i32, i32) {
    %c0_i32 = arith.constant 0 : i32
    %c0_i32_0 = arith.constant 0 : i32
    %c0_i32_1 = arith.constant 0 : i32
    %c0_i32_2 = arith.constant 0 : i32
    return %c0_i32, %c0_i32_0, %c0_i32_1 : i32, i32, i32
  }
  func.func @transform_4(%arg0: i32) -> (i32, i32) {
    %c0_i32 = arith.constant 0 : i32
    %c0_i32_0 = arith.constant 0 : i32
    %c0_i32_1 = arith.constant 0 : i32
    return %c0_i32, %c0_i32_0 : i32, i32
  }
  func.func @transform_5(%arg0: i32) -> (i32, i32, i32) {
    %c0_i32 = arith.constant 0 : i32
    %c0_i32_0 = arith.constant 0 : i32
    %c0_i32_1 = arith.constant 0 : i32
    %c0_i32_2 = arith.constant 0 : i32
    return %c0_i32, %c0_i32_0, %c0_i32_1 : i32, i32, i32
  }
  func.func @transform_6(%arg0: i32) -> (i32, i32) {
    %c0_i32 = arith.constant 0 : i32
    %c0_i32_0 = arith.constant 0 : i32
    %c0_i32_1 = arith.constant 0 : i32
    return %c0_i32, %c0_i32_0 : i32, i32
  }
  func.func @transform_7(%arg0: i32) -> (i32, i32, i32) {
    %c0_i32 = arith.constant 0 : i32
    %c0_i32_0 = arith.constant 0 : i32
    %c0_i32_1 = arith.constant 0 : i32
    %c0_i32_2 = arith.constant 0 : i32
    return %c0_i32, %c0_i32_0, %c0_i32_1 : i32, i32, i32
  }
  func.func @transform_8(%arg0: i32) -> (i32, i32) {
    %c0_i32 = arith.constant 0 : i32
    %c0_i32_0 = arith.constant 0 : i32
    %c0_i32_1 = arith.constant 0 : i32
    return %c0_i32, %c0_i32_0 : i32, i32
  }
  func.func @transform_9(%arg0: i32) -> (i32, i32, i32) {
    %c0_i32 = arith.constant 0 : i32
    %c0_i32_0 = arith.constant 0 : i32
    %c0_i32_1 = arith.constant 0 : i32
    return %arg0, %c0_i32, %c0_i32_0 : i32, i32, i32
  }
}

</mosaic_0001>

<bundles_post_ra>
// kernel: forward.1
= control target key start
LH: loop header
LB: loop body
LE: loop exit
PB: predicated region body
PF: predicated region fallthrough
CT: control target
= control target key end

     0   :  { %v4842_v1 = vmov 0   ;;  %vm4844_vm0 = vmmov 0   ;;  %s5811_s1 = inlined_call_operand.vmem [shape: bf16[3,128,256], index: 1, kind: input, shape index: {}]   ;;  %s5812_s0 = inlined_call_operand.vmem [shape: bf16[1,288,128], index: 0, kind: input, shape index: {}]   ;;  %s5813_s3 = inlined_call_operand.vmem [shape: bf16[3,128,256], index: 3, kind: input, shape index: {}]   ;;  %s5814_s2 = inlined_call_operand.vmem [shape: f32[1,256], index: 2, kind: input, shape index: {}]   ;;  %s5815_s5 = inlined_call_operand.vmem [shape: bf16[3,128,256], index: 5, kind: input, shape index: {}]   ;;  %s5816_s4 = inlined_call_operand.vmem [shape: f32[1,256], index: 4, kind: input, shape index: {}]   ;;  %s5817_s7 = inlined_call_operand.vmem [shape: bf16[2,128,128], index: 7, kind: input, shape index: {}]   ;;  %s5818_s6 = inlined_call_operand.vmem [shape: f32[1,256], index: 6, kind: input, shape index: {}]   ;;  %s5819_s8 = inlined_call_operand.vmem [shape: f32[1,128], index: 8, kind: input, shape index: {}]   ;;  %s5820_s9 = inlined_call_operand.vmem [shape: f32[1,16,128], index: 9, kind: output, shape index: {}]  }
   0x1   :  { %v4562_v0 = vld [vmem:[%s5811_s1 + $0x4] ss:$8 sps:$4 sm:$0xff]   ;;  %294 = vmatprep.mubr.bf16.mxu0 %v4842_v1  ;;  %2143 = vmatprep.mubr.bf16.mxu1 %v4842_v1  ;;  %v4564_v2 = vld [vmem:[%s5811_s1] ss:$8 sps:$4 sm:$0xff]   ;;  %v4565_v3 = vld [vmem:[%s5811_s1 + $0x14] ss:$8 sps:$4 sm:$0xff]  }
   0x2   :  { %262 = vmatprep.subr.bf16.mxu0 %v4562_v0  ;;  %v4567_v4 = vld [vmem:[%s5811_s1 + $0x10] ss:$8 sps:$4 sm:$0xff]   ;;  %v4568_v5 = vld [vmem:[%s5811_s1 + $0x24] ss:$8 sps:$4 sm:$0xff]   ;;  %v4570_v6 = vld [vmem:[%s5811_s1 + $0x20] ss:$8 sps:$4 sm:$0xff]  }
   0x3   :  { %263 = vmatpush1.bf16.msra.mxu0 %v4564_v2  ;;  %v4571_v7 = vld [vmem:[%s5811_s1 + $0x34] ss:$8 sps:$4 sm:$0xff]   ;;  %v4573_v8 = vld [vmem:[%s5811_s1 + $0x30] ss:$8 sps:$4 sm:$0xff]   ;;  %v4574_v9 = vld [vmem:[%s5811_s1 + $0x44] ss:$8 sps:$4 sm:$0xff]  }
   0x4   :  { %264 = vmatprep.subr.bf16.mxu0 %v4565_v3  ;;  %v4576_v10 = vld [vmem:[%s5811_s1 + $0x40] ss:$8 sps:$4 sm:$0xff]   ;;  %v4577_v11 = vld [vmem:[%s5811_s1 + $0x54] ss:$8 sps:$4 sm:$0xff]   ;;  %v4579_v12 = vld [vmem:[%s5811_s1 + $0x50] ss:$8 sps:$4 sm:$0xff]  }
   0x5   :  { %v4580_v13 = vld [vmem:[%s5811_s1 + $0x64] ss:$8 sps:$4 sm:$0xff]   ;;  %v4582_v14 = vld [vmem:[%s5811_s1 + $0x60] ss:$8 sps:$4 sm:$0xff]   ;;  %v4583_v15 = vld [vmem:[%s5811_s1 + $0x74] ss:$8 sps:$4 sm:$0xff]  }
   0x6   :  { %v4585_v16 = vld [vmem:[%s5811_s1 + $0x70] ss:$8 sps:$4 sm:$0xff]   ;;  %v4589_v17 = vld [vmem:[%s5811_s1 + $0x84] ss:$8 sps:$4 sm:$0xff]   ;;  %v4587_v19 = vld [vmem:[%s5811_s1 + $0x80] ss:$8 sps:$4 sm:$0xff]  }
   0x7   :  { %265 = vmatpush1.bf16.msra.mxu0 %v4567_v4  ;;  %v4586_v18 = vld [vmem:[%s5812_s0] sm:$0xff]   ;;  %v4594_v20 = vld [vmem:[%s5811_s1 + $0x94] ss:$8 sps:$4 sm:$0xff]   ;;  %v4592_v21 = vld [vmem:[%s5811_s1 + $0x90] ss:$8 sps:$4 sm:$0xff]  }
   0x8   :  { %266 = vmatprep.subr.bf16.mxu0 %v4568_v5  ;;  %v4599_v22 = vld [vmem:[%s5811_s1 + $0xa4] ss:$8 sps:$4 sm:$0xff]   ;;  %v4597_v24 = vld [vmem:[%s5811_s1 + $0xa0] ss:$8 sps:$4 sm:$0xff]   ;;  %v4604_v25 = vld [vmem:[%s5811_s1 + $0xb4] ss:$8 sps:$4 sm:$0xff]  }
   0x9   :  { %v4590_v23 = vld [vmem:[%s5812_s0 + $0x8] sm:$0xff]   ;;  %v4602_v26 = vld [vmem:[%s5811_s1 + $0xb0] ss:$8 sps:$4 sm:$0xff]   ;;  %v4614_v30 = vld [vmem:[%s5811_s1 + $0xd4] ss:$8 sps:$4 sm:$0xff]  }
   0xa   :  { %v4609_v27 = vld [vmem:[%s5811_s1 + $0xc4] ss:$8 sps:$4 sm:$0xff]   ;;  %v4591_v28 = vld [vmem:[%s5812_s0 + $0x10] sm:$0xff]   ;;  %v4607_v29 = vld [vmem:[%s5811_s1 + $0xc0] ss:$8 sps:$4 sm:$0xff]  }
   0xb   :  { %267 = vmatpush1.bf16.msra.mxu0 %v4570_v6  ;;  %v4612_v31 = vld [vmem:[%s5811_s1 + $0xd0] ss:$8 sps:$4 sm:$0xff]   ;;  %v4619_v32 = vld [vmem:[%s5811_s1 + $0xe4] ss:$8 sps:$4 sm:$0xff]   ;;  %v4617_v34 = vld [vmem:[%s5811_s1 + $0xe0] ss:$8 sps:$4 sm:$0xff]  }
   0xc   :  { %268 = vmatprep.subr.bf16.mxu0 %v4571_v7  ;;  %v4595_v33 = vld [vmem:[%s5812_s0 + $0x18] sm:$0xff]   ;;  %v4629_v37 = vld [vmem:[%s5811_s1 + $0x104] ss:$8 sps:$4 sm:$0xff]   ;;  %v4601_v40 = vld [vmem:[%s5812_s0 + $0x30] sm:$0xff]  }
   0xd   :  { %v4624_v35 = vld [vmem:[%s5811_s1 + $0xf4] ss:$8 sps:$4 sm:$0xff]   ;;  %v4622_v36 = vld [vmem:[%s5811_s1 + $0xf0] ss:$8 sps:$4 sm:$0xff]   ;;  %v4596_v38 = vld [vmem:[%s5812_s0 + $0x20] sm:$0xff]  }
   0xe   :  { %v4600_v39 = vld [vmem:[%s5812_s0 + $0x28] sm:$0xff]   ;;  %v4605_v41 = vld [vmem:[%s5812_s0 + $0x38] sm:$0xff]   ;;  %v4606_v42 = vld [vmem:[%s5812_s0 + $0x40] sm:$0xff]  }
   0xf   :  { %269 = vmatpush1.bf16.msra.mxu0 %v4573_v8  ;;  %v4610_v43 = vld [vmem:[%s5812_s0 + $0x48] sm:$0xff]   ;;  %v4611_v44 = vld [vmem:[%s5812_s0 + $0x50] sm:$0xff]   ;;  %v4615_v45 = vld [vmem:[%s5812_s0 + $0x58] sm:$0xff]  }
  0x10   :  { %270 = vmatprep.subr.bf16.mxu0 %v4574_v9  ;;  %v4616_v46 = vld [vmem:[%s5812_s0 + $0x60] sm:$0xff]   ;;  %v4620_v47 = vld [vmem:[%s5812_s0 + $0x68] sm:$0xff]   ;;  %v4621_v48 = vld [vmem:[%s5812_s0 + $0x70] sm:$0xff]  }
  0x11   :  { %v4625_v49 = vld [vmem:[%s5812_s0 + $0x78] sm:$0xff]   ;;  %v4626_v50 = vld [vmem:[%s5812_s0 + $0x8] sm:$0xff]   ;;  %v4630_v55 = vld [vmem:[%s5812_s0 + $0x10] sm:$0xff]  }
  0x12   :  { %v4627_v51 = vld [vmem:[%s5811_s1 + $0x100] ss:$8 sps:$4 sm:$0xff]   ;;  %v4634_v52 = vld [vmem:[%s5811_s1 + $0x114] ss:$8 sps:$4 sm:$0xff]   ;;  %v4632_v53 = vld [vmem:[%s5811_s1 + $0x110] ss:$8 sps:$4 sm:$0xff]  }
  0x13   :  { %271 = vmatpush1.bf16.msra.mxu0 %v4576_v10  ;;  %v4639_v54 = vld [vmem:[%s5811_s1 + $0x124] ss:$8 sps:$4 sm:$0xff]   ;;  %v4637_v56 = vld [vmem:[%s5811_s1 + $0x120] ss:$8 sps:$4 sm:$0xff]   ;;  %v4644_v57 = vld [vmem:[%s5811_s1 + $0x134] ss:$8 sps:$4 sm:$0xff]  }
  0x14   :  { %272 = vmatprep.subr.bf16.mxu0 %v4577_v11  ;;  %v4642_v58 = vld [vmem:[%s5811_s1 + $0x130] ss:$8 sps:$4 sm:$0xff]   ;;  %v4649_v59 = vld [vmem:[%s5811_s1 + $0x144] ss:$8 sps:$4 sm:$0xff]   ;;  %v4647_v61 = vld [vmem:[%s5811_s1 + $0x140] ss:$8 sps:$4 sm:$0xff]  }
  0x15   :  { %v4631_v60 = vld [vmem:[%s5812_s0 + $0x18] sm:$0xff]   ;;  %v4659_v0 = vld [vmem:[%s5811_s1 + $0x164] ss:$8 sps:$4 sm:$0xff]   ;;  %v4657_v3 = vld [vmem:[%s5811_s1 + $0x160] ss:$8 sps:$4 sm:$0xff]  }
  0x16   :  { %v4654_v62 = vld [vmem:[%s5811_s1 + $0x154] ss:$8 sps:$4 sm:$0xff]   ;;  %v4652_v63 = vld [vmem:[%s5811_s1 + $0x150] ss:$8 sps:$4 sm:$0xff]   ;;  %v4635_v2 = vld [vmem:[%s5812_s0 + $0x20] sm:$0xff]  }
  0x17   :  { %273 = vmatpush1.bf16.msra.mxu0 %v4579_v12  ;;  %v4664_v4 = vld [vmem:[%s5811_s1 + $0x174] ss:$8 sps:$4 sm:$0xff]   ;;  %v4662_v5 = vld [vmem:[%s5811_s1 + $0x170] ss:$8 sps:$4 sm:$0xff]   ;;  %v4636_v6 = vld [vmem:[%s5812_s0 + $0x28] sm:$0xff]  }
  0x18   :  { %274 = vmatprep.subr.bf16.mxu0 %v4580_v13  ;;  %v4640_v7 = vld [vmem:[%s5812_s0 + $0x30] sm:$0xff]   ;;  %v4641_v8 = vld [vmem:[%s5812_s0 + $0x38] sm:$0xff]   ;;  %v4645_v9 = vld [vmem:[%s5812_s0 + $0x40] sm:$0xff]  }
  0x19   :  { %v4646_v10 = vld [vmem:[%s5812_s0 + $0x48] sm:$0xff]   ;;  %v4650_v11 = vld [vmem:[%s5812_s0 + $0x50] sm:$0xff]   ;;  %v4651_v12 = vld [vmem:[%s5812_s0 + $0x58] sm:$0xff]  }
  0x1a   :  { %v4655_v13 = vld [vmem:[%s5812_s0 + $0x60] sm:$0xff]  }
  0x1b   :  { %275 = vmatpush1.bf16.msra.mxu0 %v4582_v14  ;;  %v4656_v14 = vld [vmem:[%s5812_s0 + $0x68] sm:$0xff]  }
  0x1c   :  { %276 = vmatprep.subr.bf16.mxu0 %v4583_v15  ;;  %v4660_v15 = vld [vmem:[%s5812_s0 + $0x70] sm:$0xff]  }
  0x1f   :  { %277 = vmatpush1.bf16.msra.mxu0 %v4585_v16  ;;  %v4661_v16 = vld [vmem:[%s5812_s0 + $0x78] sm:$0xff]  }
  0x20   :  { %744 = vmatprep.subr.bf16.mxu0 %v4589_v17  ;;  %v4665_v17 = vld [vmem:[%s5812_s0 + $0x80] sm:$0xff]  }
  0x22   :  { %295 = vmatmul.mubr.bf16.vlgmr.msra.gmra.mrb[0].mxu0 %v4586_v18  ;;  %v4682_v18 = vld [vmem:[%s5813_s3 + $0x4] ss:$8 sps:$4 sm:$0xff]  }
  0x23   :  { %745 = vmatpush1.bf16.msra.mxu0 %v4587_v19  ;;  %304 = vmatprep.mubr.bf16.mxu0 %v4842_v1  ;;  %v4684_v19 = vld [vmem:[%s5813_s3] ss:$8 sps:$4 sm:$0xff]  }
  0x24   :  { %746 = vmatprep.subr.bf16.mxu0 %v4594_v20  ;;  %2111 = vmatprep.subr.bf16.mxu1 %v4682_v18  ;;  %v4685_v20 = vld [vmem:[%s5813_s3 + $0x14] ss:$8 sps:$4 sm:$0xff]  }
  0x25   :  { %2112 = vmatpush1.bf16.msra.mxu1 %v4684_v19 }
  0x26   :  { %2113 = vmatprep.subr.bf16.mxu1 %v4685_v20 }
  0x27   :  { %747 = vmatpush1.bf16.msra.mxu0 %v4592_v21  ;;  %v4666_v21 = vld [vmem:[%s5812_s0 + $0x10] sm:$0xff]  }
  0x28   :  { %748 = vmatprep.subr.bf16.mxu0 %v4599_v22  ;;  %v4687_v22 = vld [vmem:[%s5813_s3 + $0x10] ss:$8 sps:$4 sm:$0xff]  }
  0x29   :  { %2114 = vmatpush1.bf16.msra.mxu1 %v4687_v22 }
  0x2a   :  { %305 = vmatmul.mubr.bf16.gmra.mrb[4].mxu0 %v4590_v23  ;;  %v4688_v23 = vld [vmem:[%s5813_s3 + $0x24] ss:$8 sps:$4 sm:$0xff]  }
  0x2b   :  { %314 = vmatprep.mubr.bf16.mxu0 %v4842_v1  ;;  %749 = vmatpush1.bf16.msra.mxu0 %v4597_v24  ;;  %v4690_v24 = vld [vmem:[%s5813_s3 + $0x20] ss:$8 sps:$4 sm:$0xff]  }
  0x2c   :  { %750 = vmatprep.subr.bf16.mxu0 %v4604_v25  ;;  %v4691_v25 = vld [vmem:[%s5813_s3 + $0x34] ss:$8 sps:$4 sm:$0xff]   ;;  %2115 = vmatprep.subr.bf16.mxu1 %v4688_v23 }
  0x2d   :  { %2116 = vmatpush1.bf16.msra.mxu1 %v4690_v24 }
  0x2e   :  { %2117 = vmatprep.subr.bf16.mxu1 %v4691_v25 }
  0x2f   :  { %751 = vmatpush1.bf16.msra.mxu0 %v4602_v26  ;;  %v4667_v26 = vld [vmem:[%s5812_s0 + $0x18] sm:$0xff]  }
  0x30   :  { %752 = vmatprep.subr.bf16.mxu0 %v4609_v27  ;;  %v4693_v27 = vld [vmem:[%s5813_s3 + $0x30] ss:$8 sps:$4 sm:$0xff]  }
  0x31   :  { %2118 = vmatpush1.bf16.msra.mxu1 %v4693_v27 }
  0x32   :  { %315 = vmatmul.mubr.bf16.gmra.mrb[8].mxu0 %v4591_v28  ;;  %v4694_v28 = vld [vmem:[%s5813_s3 + $0x44] ss:$8 sps:$4 sm:$0xff]  }
  0x33   :  { %324 = vmatprep.mubr.bf16.mxu0 %v4842_v1  ;;  %753 = vmatpush1.bf16.msra.mxu0 %v4607_v29  ;;  %v4696_v29 = vld [vmem:[%s5813_s3 + $0x40] ss:$8 sps:$4 sm:$0xff]  }
  0x34   :  { %754 = vmatprep.subr.bf16.mxu0 %v4614_v30  ;;  %2119 = vmatprep.subr.bf16.mxu1 %v4694_v28  ;;  %v4668_v30 = vld [vmem:[%s5812_s0 + $0x20] sm:$0xff]  }
  0x35   :  { %2120 = vmatpush1.bf16.msra.mxu1 %v4696_v29 }
  0x37   :  { %755 = vmatpush1.bf16.msra.mxu0 %v4612_v31  ;;  %v4669_v31 = vld [vmem:[%s5812_s0 + $0x28] sm:$0xff]  }
  0x38   :  { %756 = vmatprep.subr.bf16.mxu0 %v4619_v32  ;;  %v4670_v32 = vld [vmem:[%s5812_s0 + $0x30] sm:$0xff]  }
  0x3a   :  { %325 = vmatmul.mubr.bf16.gmra.mrb[12].mxu0 %v4595_v33  ;;  %v4671_v33 = vld [vmem:[%s5812_s0 + $0x38] sm:$0xff]  }
  0x3b   :  { %334 = vmatprep.mubr.bf16.mxu0 %v4842_v1  ;;  %757 = vmatpush1.bf16.msra.mxu0 %v4617_v34  ;;  %v4672_v34 = vld [vmem:[%s5812_s0 + $0x40] sm:$0xff]  }
  0x3c   :  { %758 = vmatprep.subr.bf16.mxu0 %v4624_v35  ;;  %v4673_v35 = vld [vmem:[%s5812_s0 + $0x48] sm:$0xff]  }
  0x3f   :  { %759 = vmatpush1.bf16.msra.mxu0 %v4622_v36  ;;  %v4674_v36 = vld [vmem:[%s5812_s0 + $0x50] sm:$0xff]  }
  0x40   :  { %1354 = vmatprep.subr.bf16.mxu0 %v4629_v37  ;;  %v4675_v37 = vld [vmem:[%s5812_s0 + $0x58] sm:$0xff]  }
  0x42   :  { %335 = vmatmul.mubr.bf16.gmra.mrb[16].mxu0 %v4596_v38  ;;  %v4676_v38 = vld [vmem:[%s5812_s0 + $0x60] sm:$0xff]  }
  0x43   :  { %344 = vmatprep.mubr.bf16.mxu0 %v4842_v1 }
  0x4a   :  { %345 = vmatmul.mubr.bf16.gmra.mrb[20].mxu0 %v4600_v39  ;;  %v4697_v39 = vld [vmem:[%s5813_s3 + $0x54] ss:$8 sps:$4 sm:$0xff]  }
  0x4b   :  { %354 = vmatprep.mubr.bf16.mxu0 %v4842_v1  ;;  %2121 = vmatprep.subr.bf16.mxu1 %v4697_v39 }
  0x52   :  { %355 = vmatmul.mubr.bf16.gmra.mrb[24].mxu0 %v4601_v40  ;;  %v4677_v40 = vld [vmem:[%s5812_s0 + $0x68] sm:$0xff]  }
  0x53   :  { %364 = vmatprep.mubr.bf16.mxu0 %v4842_v1 }
  0x5a   :  { %365 = vmatmul.mubr.bf16.gmra.mrb[28].mxu0 %v4605_v41  ;;  %v4699_v41 = vld [vmem:[%s5813_s3 + $0x50] ss:$8 sps:$4 sm:$0xff]  }
  0x5b   :  { %374 = vmatprep.mubr.bf16.mxu0 %v4842_v1  ;;  %2122 = vmatpush1.bf16.msra.mxu1 %v4699_v41 }
  0x62   :  { %375 = vmatmul.mubr.bf16.gmra.mrb[32].mxu0 %v4606_v42  ;;  %v4700_v42 = vld [vmem:[%s5813_s3 + $0x64] ss:$8 sps:$4 sm:$0xff]  }
  0x63   :  { %384 = vmatprep.mubr.bf16.mxu0 %v4842_v1  ;;  %2123 = vmatprep.subr.bf16.mxu1 %v4700_v42 }
  0x6a   :  { %385 = vmatmul.mubr.bf16.gmra.mrb[36].mxu0 %v4610_v43  ;;  %v4702_v43 = vld [vmem:[%s5813_s3 + $0x60] ss:$8 sps:$4 sm:$0xff]  }
  0x6b   :  { %394 = vmatprep.mubr.bf16.mxu0 %v4842_v1  ;;  %2124 = vmatpush1.bf16.msra.mxu1 %v4702_v43 }
  0x72   :  { %395 = vmatmul.mubr.bf16.gmra.mrb[40].mxu0 %v4611_v44  ;;  %v4703_v44 = vld [vmem:[%s5813_s3 + $0x74] ss:$8 sps:$4 sm:$0xff]  }
  0x73   :  { %404 = vmatprep.mubr.bf16.mxu0 %v4842_v1  ;;  %2125 = vmatprep.subr.bf16.mxu1 %v4703_v44 }
  0x7a   :  { %405 = vmatmul.mubr.bf16.gmra.mrb[44].mxu0 %v4615_v45  ;;  %v4678_v45 = vld [vmem:[%s5812_s0 + $0x70] sm:$0xff]  }
  0x7b   :  { %414 = vmatprep.mubr.bf16.mxu0 %v4842_v1 }
  0x82   :  { %415 = vmatmul.mubr.bf16.gmra.mrb[48].mxu0 %v4616_v46  ;;  %v4705_v46 = vld [vmem:[%s5813_s3 + $0x70] ss:$8 sps:$4 sm:$0xff]  }
  0x83   :  { %424 = vmatprep.mubr.bf16.mxu0 %v4842_v1  ;;  %2126 = vmatpush1.bf16.msra.mxu1 %v4705_v46 }
  0x86   :  { %2144 = vmatmul.mubr.bf16.vlgmr.msra.gmra.mrb[0].mxu1 %v4842_v1 }
  0x87   :  { %2153 = vmatprep.mubr.bf16.mxu1 %v4842_v1 }
  0x8a   :  { %425 = vmatmul.mubr.bf16.gmra.mrb[52].mxu0 %v4620_v47  ;;  %v4679_v47 = vld [vmem:[%s5812_s0 + $0x78] sm:$0xff]  }
  0x8b   :  { %434 = vmatprep.mubr.bf16.mxu0 %v4842_v1 }
  0x92   :  { %435 = vmatmul.mubr.bf16.gmra.mrb[56].mxu0 %v4621_v48  ;;  %v4680_v48 = vld [vmem:[%s5812_s0 + $0x80] sm:$0xff]  }
  0x93   :  { %444 = vmatprep.mubr.bf16.mxu0 %v4842_v1 }
  0x9a   :  { %445 = vmatmul.mubr.bf16.gmra.mrb[60].mxu0 %v4625_v49  ;;  %v4681_v49 = vld [vmem:[%s5812_s0 + $0x88] sm:$0xff]  }
  0x9b   :  { %776 = vmatprep.mubr.bf16.mxu0 %v4842_v1 }
  0xa2   :  { %777 = vmatmul.mubr.bf16.vlgmr.msra.gmra.mrb[0].mxu0 %v4626_v50  ;;  %v4706_v50 = vld [vmem:[%s5813_s3 + $0x80] ss:$8 sps:$4 sm:$0xff]  }
  0xa3   :  { %1355 = vmatpush1.bf16.msra.mxu0 %v4627_v51  ;;  %786 = vmatprep.mubr.bf16.mxu0 %v4842_v1  ;;  %v4708_v51 = vld [vmem:[%s5813_s3 + $0x84] ss:$8 sps:$4 sm:$0xff]  }
  0xa4   :  { %1356 = vmatprep.subr.bf16.mxu0 %v4634_v52  ;;  %2361 = vmatprep.subr.bf16.mxu1 %v4708_v51  ;;  %v4709_v52 = vld [vmem:[%s5813_s3 + $0x90] ss:$8 sps:$4 sm:$0xff]  }
  0xa5   :  { %2362 = vmatpush1.bf16.msra.mxu1 %v4706_v50 }
  0xa7   :  { %1357 = vmatpush1.bf16.msra.mxu0 %v4632_v53  ;;  %v4711_v53 = vld [vmem:[%s5813_s3 + $0x94] ss:$8 sps:$4 sm:$0xff]  }
  0xa8   :  { %1358 = vmatprep.subr.bf16.mxu0 %v4639_v54  ;;  %2363 = vmatprep.subr.bf16.mxu1 %v4711_v53  ;;  %v4712_v54 = vld [vmem:[%s5813_s3 + $0xa0] ss:$8 sps:$4 sm:$0xff]  }
  0xa9   :  { %2364 = vmatpush1.bf16.msra.mxu1 %v4709_v52 }
  0xaa   :  { %787 = vmatmul.mubr.bf16.gmra.mrb[4].mxu0 %v4630_v55  ;;  %v4714_v55 = vld [vmem:[%s5813_s3 + $0xa4] ss:$8 sps:$4 sm:$0xff]  }
  0xab   :  { %796 = vmatprep.mubr.bf16.mxu0 %v4842_v1  ;;  %1359 = vmatpush1.bf16.msra.mxu0 %v4637_v56  ;;  %v4715_v56 = vld [vmem:[%s5813_s3 + $0xb0] ss:$8 sps:$4 sm:$0xff]  }
  0xac   :  { %1360 = vmatprep.subr.bf16.mxu0 %v4644_v57  ;;  %2365 = vmatprep.subr.bf16.mxu1 %v4714_v55  ;;  %v4717_v57 = vld [vmem:[%s5813_s3 + $0xb4] ss:$8 sps:$4 sm:$0xff]  }
  0xad   :  { %2366 = vmatpush1.bf16.msra.mxu1 %v4712_v54 }
  0xae   :  { %2367 = vmatprep.subr.bf16.mxu1 %v4717_v57 }
  0xaf   :  { %1361 = vmatpush1.bf16.msra.mxu0 %v4642_v58  ;;  %v4718_v58 = vld [vmem:[%s5813_s3 + $0xc0] ss:$8 sps:$4 sm:$0xff]  }
  0xb0   :  { %1362 = vmatprep.subr.bf16.mxu0 %v4649_v59  ;;  %v4720_v59 = vld [vmem:[%s5813_s3 + $0xc4] ss:$8 sps:$4 sm:$0xff]  }
  0xb1   :  { %2368 = vmatpush1.bf16.msra.mxu1 %v4715_v56 }
  0xb2   :  { %797 = vmatmul.mubr.bf16.gmra.mrb[8].mxu0 %v4631_v60  ;;  %2369 = vmatprep.subr.bf16.mxu1 %v4720_v59  ;;  %v4721_v60 = vld [vmem:[%s5813_s3 + $0xd0] ss:$8 sps:$4 sm:$0xff]  }
  0xb3   :  { %806 = vmatprep.mubr.bf16.mxu0 %v4842_v1  ;;  %1363 = vmatpush1.bf16.msra.mxu0 %v4647_v61  ;;  %v4723_v61 = vld [vmem:[%s5813_s3 + $0xd4] ss:$8 sps:$4 sm:$0xff]  }
  0xb4   :  { %1364 = vmatprep.subr.bf16.mxu0 %v4654_v62  ;;  %v4724_v62 = vld [vmem:[%s5813_s3 + $0xe0] ss:$8 sps:$4 sm:$0xff]  }
  0xb5   :  { %2370 = vmatpush1.bf16.msra.mxu1 %v4718_v58 }
  0xb6   :  { %2371 = vmatprep.subr.bf16.mxu1 %v4723_v61 }
  0xb7   :  { %1365 = vmatpush1.bf16.msra.mxu0 %v4652_v63  ;;  %v4726_v63 = vld [vmem:[%s5813_s3 + $0xe4] ss:$8 sps:$4 sm:$0xff]  }
  0xb8   :  { %1366 = vmatprep.subr.bf16.mxu0 %v4659_v0  ;;  %v4727_v0 = vld [vmem:[%s5813_s3 + $0xf0] ss:$8 sps:$4 sm:$0xff]  }
  0xb9   :  { %2372 = vmatpush1.bf16.msra.mxu1 %v4721_v60 }
  0xba   :  { %807 = vmatmul.mubr.bf16.gmra.mrb[12].mxu0 %v4635_v2  ;;  %2373 = vmatprep.subr.bf16.mxu1 %v4726_v63  ;;  %v4729_v2 = vld [vmem:[%s5813_s3 + $0xf4] ss:$8 sps:$4 sm:$0xff]  }
  0xbb   :  { %816 = vmatprep.mubr.bf16.mxu0 %v4842_v1  ;;  %1367 = vmatpush1.bf16.msra.mxu0 %v4657_v3  ;;  %v1748_v3 = vlaneseq }
  0xbc   :  { %1368 = vmatprep.subr.bf16.mxu0 %v4664_v4 }
  0xbd   :  { %2374 = vmatpush1.bf16.msra.mxu1 %v4724_v62  ;;  %v1749_v4 = vshrl.u32 %v1748_v3, 7 }
  0xbe   :  { %2375 = vmatprep.subr.bf16.mxu1 %v4729_v2 }
  0xbf   :  { %1369 = vmatpush1.bf16.msra.mxu0 %v4662_v5  ;;  %v5330_v5 = vsub.s32 0, %v1749_v4 }
  0xc1   :  { %2376 = vmatpush1.bf16.msra.mxu1 %v4727_v0 }
  0xc2   :  { %817 = vmatmul.mubr.bf16.gmra.mrb[16].mxu0 %v4636_v6  ;;  %v37_v6 = vld [vmem:[%s5814_s2] sm:$0x3] }
  0xc3   :  { %826 = vmatprep.mubr.bf16.mxu0 %v4842_v1 }
  0xca   :  { %827 = vmatmul.mubr.bf16.gmra.mrb[20].mxu0 %v4640_v7 }
  0xcb   :  { %836 = vmatprep.mubr.bf16.mxu0 %v4842_v1 }
  0xd2   :  { %837 = vmatmul.mubr.bf16.gmra.mrb[24].mxu0 %v4641_v8  ;;  %v5335_v8 = vsub.s32 1, %v1749_v4 }
  0xd3   :  { %846 = vmatprep.mubr.bf16.mxu0 %v4842_v1 }
  0xda   :  { %847 = vmatmul.mubr.bf16.gmra.mrb[28].mxu0 %v4645_v9 }
  0xdb   :  { %856 = vmatprep.mubr.bf16.mxu0 %v4842_v1 }
  0xe2   :  { %857 = vmatmul.mubr.bf16.gmra.mrb[32].mxu0 %v4646_v10 }
  0xe3   :  { %866 = vmatprep.mubr.bf16.mxu0 %v4842_v1 }
  0xea   :  { %867 = vmatmul.mubr.bf16.gmra.mrb[36].mxu0 %v4650_v11  ;;  %v4732_v11 = vld [vmem:[%s5813_s3 + $0x104] ss:$8 sps:$4 sm:$0xff]  }
  0xeb   :  { %876 = vmatprep.mubr.bf16.mxu0 %v4842_v1  ;;  %2675 = vmatprep.subr.bf16.mxu1 %v4732_v11 }
  0xf2   :  { %877 = vmatmul.mubr.bf16.gmra.mrb[40].mxu0 %v4651_v12  ;;  %v5341_v12 = vrot.slane %v37_v6, %v5330_v5 }
  0xf3   :  { %886 = vmatprep.mubr.bf16.mxu0 %v4842_v1 }
  0xfa   :  { %887 = vmatmul.mubr.bf16.gmra.mrb[44].mxu0 %v4655_v13 }
  0xfb   :  { %896 = vmatprep.mubr.bf16.mxu0 %v4842_v1 }
 0x102   :  { %897 = vmatmul.mubr.bf16.gmra.mrb[48].mxu0 %v4656_v14  ;;  %v5344_v14 = vrot.slane %v37_v6, %v5335_v8 }
 0x103   :  { %906 = vmatprep.mubr.bf16.mxu0 %v4842_v1 }
 0x10a   :  { %907 = vmatmul.mubr.bf16.gmra.mrb[52].mxu0 %v4660_v15 }
 0x10b   :  { %916 = vmatprep.mubr.bf16.mxu0 %v4842_v1 }
 0x112   :  { %917 = vmatmul.mubr.bf16.gmra.mrb[56].mxu0 %v4661_v16 }
 0x113   :  { %926 = vmatprep.mubr.bf16.mxu0 %v4842_v1 }
 0x11a   :  { %927 = vmatmul.mubr.bf16.gmra.mrb[60].mxu0 %v4665_v17 }
 0x11b   :  { %1386 = vmatprep.mubr.bf16.mxu0 %v4842_v1 }
 0x122   :  { %1387 = vmatmul.mubr.bf16.vlgmr.msra.gmra.mrb[0].mxu0 %v4666_v21 }
 0x123   :  { %1396 = vmatprep.mubr.bf16.mxu0 %v4842_v1 }
 0x12a   :  { %1397 = vmatmul.mubr.bf16.gmra.mrb[4].mxu0 %v4667_v26 }
 0x12b   :  { %1406 = vmatprep.mubr.bf16.mxu0 %v4842_v1 }
 0x132   :  { %1407 = vmatmul.mubr.bf16.gmra.mrb[8].mxu0 %v4668_v30 }
 0x133   :  { %1416 = vmatprep.mubr.bf16.mxu0 %v4842_v1 }
 0x13a   :  { %1417 = vmatmul.mubr.bf16.gmra.mrb[12].mxu0 %v4669_v31 }
 0x13b   :  { %1426 = vmatprep.mubr.bf16.mxu0 %v4842_v1 }
 0x142   :  { %1427 = vmatmul.mubr.bf16.gmra.mrb[16].mxu0 %v4670_v32 }
 0x143   :  { %1436 = vmatprep.mubr.bf16.mxu0 %v4842_v1 }
 0x14a   :  { %1437 = vmatmul.mubr.bf16.gmra.mrb[20].mxu0 %v4671_v33 }
 0x14b   :  { %1446 = vmatprep.mubr.bf16.mxu0 %v4842_v1 }
 0x152   :  { %1447 = vmatmul.mubr.bf16.gmra.mrb[24].mxu0 %v4672_v34 }
 0x153   :  { %1456 = vmatprep.mubr.bf16.mxu0 %v4842_v1 }
 0x15a   :  { %1457 = vmatmul.mubr.bf16.gmra.mrb[28].mxu0 %v4673_v35 }
 0x15b   :  { %1466 = vmatprep.mubr.bf16.mxu0 %v4842_v1 }
 0x162   :  { %1467 = vmatmul.mubr.bf16.gmra.mrb[32].mxu0 %v4674_v36 }
 0x163   :  { %1476 = vmatprep.mubr.bf16.mxu0 %v4842_v1 }
 0x16a   :  { %1477 = vmatmul.mubr.bf16.gmra.mrb[36].mxu0 %v4675_v37 }
 0x16b   :  { %1486 = vmatprep.mubr.bf16.mxu0 %v4842_v1 }
 0x172   :  { %1487 = vmatmul.mubr.bf16.gmra.mrb[40].mxu0 %v4676_v38 }
 0x173   :  { %1496 = vmatprep.mubr.bf16.mxu0 %v4842_v1 }
 0x17a   :  { %1497 = vmatmul.mubr.bf16.gmra.mrb[44].mxu0 %v4677_v40 }
 0x17b   :  { %1506 = vmatprep.mubr.bf16.mxu0 %v4842_v1 }
 0x182   :  { %1507 = vmatmul.mubr.bf16.gmra.mrb[48].mxu0 %v4678_v45 }
 0x183   :  { %1516 = vmatprep.mubr.bf16.mxu0 %v4842_v1 }
 0x18a   :  { %1517 = vmatmul.mubr.bf16.gmra.mrb[52].mxu0 %v4679_v47 }
 0x18b   :  { %1526 = vmatprep.mubr.bf16.mxu0 %v4842_v1 }
 0x192   :  { %1527 = vmatmul.mubr.bf16.gmra.mrb[56].mxu0 %v4680_v48 }
 0x193   :  { %1536 = vmatprep.mubr.bf16.mxu0 %v4842_v1 }
 0x19a   :  { %1537 = vmatmul.mubr.bf16.gmra.mrb[60].mxu0 %v4681_v49 }
 0x1f5   :  { %v1388_v7 = vpop.f32.mrb[0].mxu0 }
 0x1f6   :  { %v1390_v9 = vpop.f32.mrb[1].mxu0  ;;  %v1758_v15 = vadd.f32 %v5341_v12, %v1388_v7 }
 0x1f7   :  { %v1392_v10 = vpop.f32.mrb[2].mxu0  ;;  %v1759_v16 = vadd.f32 %v5344_v14, %v1390_v9 }
 0x1f8   :  { %v1394_v13 = vpop.f32.mrb[3].mxu0  ;;  %v1760_v18 = vadd.f32 %v5341_v12, %v1392_v10  ;;  %v1766_v24 = vmax.f32 %v1758_v15, 0.0 }
 0x1f9   :  { %v1761_v21 = vadd.f32 %v5344_v14, %v1394_v13  ;;  %v1767_v28 = vmax.f32 %v1759_v16, 0.0 }
 0x1fa   :  { %v1768_v31 = vmax.f32 %v1760_v18, 0.0 }
 0x1fb   :  { %v1769_v34 = vmax.f32 %v1761_v21, 0.0 }
 0x1fd   :  { %v1398_v17 = vpop.f32.mrb[4].mxu0 }
 0x1fe   :  { %v1762_v19 = vadd.f32 %v5341_v12, %v1398_v17  ;;  %v1400_v20 = vpop.f32.mrb[5].mxu0 }
 0x1ff   :  { %v1763_v22 = vadd.f32 %v5344_v14, %v1400_v20  ;;  %v1402_v23 = vpop.f32.mrb[6].mxu0 }
 0x200   :  { %v1770_v25 = vmax.f32 %v1762_v19, 0.0  ;;  %v1764_v26 = vadd.f32 %v5341_v12, %v1402_v23  ;;  %v1404_v27 = vpop.f32.mrb[7].mxu0 }
 0x201   :  { %v1771_v29 = vmax.f32 %v1763_v22, 0.0  ;;  %v1765_v30 = vadd.f32 %v5344_v14, %v1404_v27 }
 0x202   :  { %v1774_v32 = vmax.f32 %v1766_v24, %v1770_v25  ;;  %v1772_v33 = vmax.f32 %v1764_v26, 0.0 }
 0x203   :  { %v1775_v35 = vmax.f32 %v1767_v28, %v1771_v29  ;;  %v1773_v36 = vmax.f32 %v1765_v30, 0.0 }
 0x204   :  { %v1776_v37 = vmax.f32 %v1768_v31, %v1772_v33 }
 0x205   :  { %v1778_v38 = vmax.f32 %v1774_v32, %v1775_v35  ;;  %v1777_v39 = vmax.f32 %v1769_v34, %v1773_v36  ;;  %v1408_v40 = vpop.f32.mrb[8].mxu0 }
 0x206   :  { %v1410_v41 = vpop.f32.mrb[9].mxu0  ;;  %v1790_v46 = vadd.f32 %v5341_v12, %v1408_v40 }
 0x207   :  { %v1779_v42 = vmax.f32 %v1776_v37, %v1777_v39  ;;  %v1412_v43 = vpop.f32.mrb[10].mxu0  ;;  %v1791_v47 = vadd.f32 %v5344_v14, %v1410_v41 }
 0x208   :  { %v1414_v44 = vpop.f32.mrb[11].mxu0  ;;  %v1792_v49 = vadd.f32 %v5341_v12, %v1412_v43  ;;  %v1798_v55 = vmax.f32 %v1790_v46, 0.0 }
 0x209   :  { %v5354_v45 = vpack.c.bf16 %v1779_v42, %v1778_v38  ;;  %v1793_v52 = vadd.f32 %v5344_v14, %v1414_v44  ;;  %v1799_v59 = vmax.f32 %v1791_v47, 0.0 }
 0x20a   :  { %v1800_v62 = vmax.f32 %v1792_v49, 0.0 }
 0x20b   :  { %2154 = vmatmul.mubr.bf16.gmra.mrb[4].mxu1 %v5354_v45  ;;  %v1801_v2 = vmax.f32 %v1793_v52, 0.0 }
 0x20c   :  { %2163 = vmatprep.mubr.bf16.mxu1 %v4842_v1 }
 0x20d   :  { %v1418_v48 = vpop.f32.mrb[12].mxu0 }
 0x20e   :  { %v1794_v50 = vadd.f32 %v5341_v12, %v1418_v48  ;;  %v1420_v51 = vpop.f32.mrb[13].mxu0 }
 0x20f   :  { %v1795_v53 = vadd.f32 %v5344_v14, %v1420_v51  ;;  %v1422_v54 = vpop.f32.mrb[14].mxu0 }
 0x210   :  { %v1802_v56 = vmax.f32 %v1794_v50, 0.0  ;;  %v1796_v57 = vadd.f32 %v5341_v12, %v1422_v54  ;;  %v1424_v58 = vpop.f32.mrb[15].mxu0 }
 0x211   :  { %v1803_v60 = vmax.f32 %v1795_v53, 0.0  ;;  %v1797_v61 = vadd.f32 %v5344_v14, %v1424_v58 }
 0x212   :  { %v1806_v63 = vmax.f32 %v1798_v55, %v1802_v56  ;;  %v1804_v0 = vmax.f32 %v1796_v57, 0.0 }
 0x213   :  { %v1807_v3 = vmax.f32 %v1799_v59, %v1803_v60  ;;  %v1805_v4 = vmax.f32 %v1797_v61, 0.0 }
 0x214   :  { %v1808_v6 = vmax.f32 %v1800_v62, %v1804_v0 }
 0x215   :  { %v1810_v7 = vmax.f32 %v1806_v63, %v1807_v3  ;;  %v1809_v9 = vmax.f32 %v1801_v2, %v1805_v4  ;;  %v1428_v10 = vpop.f32.mrb[16].mxu0 }
 0x216   :  { %v1430_v11 = vpop.f32.mrb[17].mxu0  ;;  %v1822_v18 = vadd.f32 %v5341_v12, %v1428_v10 }
 0x217   :  { %v1811_v13 = vmax.f32 %v1808_v6, %v1809_v9  ;;  %v1432_v15 = vpop.f32.mrb[18].mxu0  ;;  %v1823_v19 = vadd.f32 %v5344_v14, %v1430_v11 }
 0x218   :  { %v1434_v16 = vpop.f32.mrb[19].mxu0  ;;  %v1824_v21 = vadd.f32 %v5341_v12, %v1432_v15  ;;  %v1830_v27 = vmax.f32 %v1822_v18, 0.0 }
 0x219   :  { %v5366_v17 = vpack.c.bf16 %v1811_v13, %v1810_v7  ;;  %v1825_v24 = vadd.f32 %v5344_v14, %v1434_v16  ;;  %v1831_v31 = vmax.f32 %v1823_v19, 0.0 }
 0x21a   :  { %v1832_v34 = vmax.f32 %v1824_v21, 0.0 }
 0x21b   :  { %2164 = vmatmul.mubr.bf16.gmra.mrb[8].mxu1 %v5366_v17  ;;  %v1833_v37 = vmax.f32 %v1825_v24, 0.0 }
 0x21c   :  { %2173 = vmatprep.mubr.bf16.mxu1 %v4842_v1 }
 0x21d   :  { %v1438_v20 = vpop.f32.mrb[20].mxu0 }
 0x21e   :  { %v1826_v22 = vadd.f32 %v5341_v12, %v1438_v20  ;;  %v1440_v23 = vpop.f32.mrb[21].mxu0 }
 0x21f   :  { %v1827_v25 = vadd.f32 %v5344_v14, %v1440_v23  ;;  %v1442_v26 = vpop.f32.mrb[22].mxu0 }
 0x220   :  { %v1834_v28 = vmax.f32 %v1826_v22, 0.0  ;;  %v1828_v29 = vadd.f32 %v5341_v12, %v1442_v26  ;;  %v1444_v30 = vpop.f32.mrb[23].mxu0 }
 0x221   :  { %v1835_v32 = vmax.f32 %v1827_v25, 0.0  ;;  %v1829_v33 = vadd.f32 %v5344_v14, %v1444_v30 }
 0x222   :  { %v1838_v35 = vmax.f32 %v1830_v27, %v1834_v28  ;;  %v1836_v36 = vmax.f32 %v1828_v29, 0.0 }
 0x223   :  { %v1839_v38 = vmax.f32 %v1831_v31, %v1835_v32  ;;  %v1837_v39 = vmax.f32 %v1829_v33, 0.0 }
 0x224   :  { %v1840_v40 = vmax.f32 %v1832_v34, %v1836_v36 }
 0x225   :  { %v1842_v41 = vmax.f32 %v1838_v35, %v1839_v38  ;;  %v1841_v42 = vmax.f32 %v1833_v37, %v1837_v39  ;;  %v1448_v43 = vpop.f32.mrb[24].mxu0 }
 0x226   :  { %v1450_v44 = vpop.f32.mrb[25].mxu0  ;;  %v1854_v50 = vadd.f32 %v5341_v12, %v1448_v43 }
 0x227   :  { %v1843_v46 = vmax.f32 %v1840_v40, %v1841_v42  ;;  %v1452_v47 = vpop.f32.mrb[26].mxu0  ;;  %v1855_v51 = vadd.f32 %v5344_v14, %v1450_v44 }
 0x228   :  { %v1454_v48 = vpop.f32.mrb[27].mxu0  ;;  %v1856_v53 = vadd.f32 %v5341_v12, %v1452_v47  ;;  %v1862_v59 = vmax.f32 %v1854_v50, 0.0 }
 0x229   :  { %v5378_v49 = vpack.c.bf16 %v1843_v46, %v1842_v41  ;;  %v1857_v56 = vadd.f32 %v5344_v14, %v1454_v48  ;;  %v1863_v63 = vmax.f32 %v1855_v51, 0.0 }
 0x22a   :  { %v1864_v3 = vmax.f32 %v1856_v53, 0.0 }
 0x22b   :  { %2174 = vmatmul.mubr.bf16.gmra.mrb[12].mxu1 %v5378_v49  ;;  %v1865_v7 = vmax.f32 %v1857_v56, 0.0 }
 0x22c   :  { %2183 = vmatprep.mubr.bf16.mxu1 %v4842_v1 }
 0x22d   :  { %v1458_v52 = vpop.f32.mrb[28].mxu0 }
 0x22e   :  { %v1858_v54 = vadd.f32 %v5341_v12, %v1458_v52  ;;  %v1460_v55 = vpop.f32.mrb[29].mxu0 }
 0x22f   :  { %v1859_v57 = vadd.f32 %v5344_v14, %v1460_v55  ;;  %v1462_v58 = vpop.f32.mrb[30].mxu0 }
 0x230   :  { %v1866_v60 = vmax.f32 %v1858_v54, 0.0  ;;  %v1860_v61 = vadd.f32 %v5341_v12, %v1462_v58  ;;  %v1464_v62 = vpop.f32.mrb[31].mxu0 }
 0x231   :  { %v1867_v0 = vmax.f32 %v1859_v57, 0.0  ;;  %v1861_v2 = vadd.f32 %v5344_v14, %v1464_v62 }
 0x232   :  { %v1870_v4 = vmax.f32 %v1862_v59, %v1866_v60  ;;  %v1868_v6 = vmax.f32 %v1860_v61, 0.0 }
 0x233   :  { %v1871_v9 = vmax.f32 %v1863_v63, %v1867_v0  ;;  %v1869_v10 = vmax.f32 %v1861_v2, 0.0 }
 0x234   :  { %v1872_v11 = vmax.f32 %v1864_v3, %v1868_v6 }
 0x235   :  { %v1874_v13 = vmax.f32 %v1870_v4, %v1871_v9  ;;  %v1873_v15 = vmax.f32 %v1865_v7, %v1869_v10  ;;  %v1468_v16 = vpop.f32.mrb[32].mxu0 }
 0x236   :  { %v1470_v18 = vpop.f32.mrb[33].mxu0  ;;  %v1886_v23 = vadd.f32 %v5341_v12, %v1468_v16 }
 0x237   :  { %v1875_v19 = vmax.f32 %v1872_v11, %v1873_v15  ;;  %v1472_v20 = vpop.f32.mrb[34].mxu0  ;;  %v1887_v24 = vadd.f32 %v5344_v14, %v1470_v18 }
 0x238   :  { %v1474_v21 = vpop.f32.mrb[35].mxu0  ;;  %v1888_v26 = vadd.f32 %v5341_v12, %v1472_v20  ;;  %v1894_v32 = vmax.f32 %v1886_v23, 0.0 }
 0x239   :  { %v5390_v22 = vpack.c.bf16 %v1875_v19, %v1874_v13  ;;  %v1889_v29 = vadd.f32 %v5344_v14, %v1474_v21  ;;  %v1895_v36 = vmax.f32 %v1887_v24, 0.0 }
 0x23a   :  { %v1896_v39 = vmax.f32 %v1888_v26, 0.0 }
 0x23b   :  { %2184 = vmatmul.mubr.bf16.gmra.mrb[16].mxu1 %v5390_v22  ;;  %v1897_v42 = vmax.f32 %v1889_v29, 0.0 }
 0x23c   :  { %2193 = vmatprep.mubr.bf16.mxu1 %v4842_v1 }
 0x23d   :  { %v1478_v25 = vpop.f32.mrb[36].mxu0 }
 0x23e   :  { %v1890_v27 = vadd.f32 %v5341_v12, %v1478_v25  ;;  %v1480_v28 = vpop.f32.mrb[37].mxu0 }
 0x23f   :  { %v1891_v30 = vadd.f32 %v5344_v14, %v1480_v28  ;;  %v1482_v31 = vpop.f32.mrb[38].mxu0 }
 0x240   :  { %v1898_v33 = vmax.f32 %v1890_v27, 0.0  ;;  %v1892_v34 = vadd.f32 %v5341_v12, %v1482_v31  ;;  %v1484_v35 = vpop.f32.mrb[39].mxu0 }
 0x241   :  { %v1899_v37 = vmax.f32 %v1891_v30, 0.0  ;;  %v1893_v38 = vadd.f32 %v5344_v14, %v1484_v35 }
 0x242   :  { %v1902_v40 = vmax.f32 %v1894_v32, %v1898_v33  ;;  %v1900_v41 = vmax.f32 %v1892_v34, 0.0 }
 0x243   :  { %v1903_v43 = vmax.f32 %v1895_v36, %v1899_v37  ;;  %v1901_v44 = vmax.f32 %v1893_v38, 0.0 }
 0x244   :  { %v1904_v46 = vmax.f32 %v1896_v39, %v1900_v41 }
 0x245   :  { %v1906_v47 = vmax.f32 %v1902_v40, %v1903_v43  ;;  %v1905_v48 = vmax.f32 %v1897_v42, %v1901_v44  ;;  %v1488_v50 = vpop.f32.mrb[40].mxu0 }
 0x246   :  { %v1490_v51 = vpop.f32.mrb[41].mxu0  ;;  %v1918_v56 = vadd.f32 %v5341_v12, %v1488_v50 }
 0x247   :  { %v1907_v52 = vmax.f32 %v1904_v46, %v1905_v48  ;;  %v1492_v53 = vpop.f32.mrb[42].mxu0  ;;  %v1919_v57 = vadd.f32 %v5344_v14, %v1490_v51 }
 0x248   :  { %v1494_v54 = vpop.f32.mrb[43].mxu0  ;;  %v1920_v59 = vadd.f32 %v5341_v12, %v1492_v53  ;;  %v1926_v2 = vmax.f32 %v1918_v56, 0.0 }
 0x249   :  { %v5402_v55 = vpack.c.bf16 %v1907_v52, %v1906_v47  ;;  %v1921_v62 = vadd.f32 %v5344_v14, %v1494_v54  ;;  %v1927_v7 = vmax.f32 %v1919_v57, 0.0 }
 0x24a   :  { %v1928_v11 = vmax.f32 %v1920_v59, 0.0 }
 0x24b   :  { %2194 = vmatmul.mubr.bf16.gmra.mrb[20].mxu1 %v5402_v55  ;;  %v1929_v16 = vmax.f32 %v1921_v62, 0.0 }
 0x24c   :  { %2203 = vmatprep.mubr.bf16.mxu1 %v4842_v1 }
 0x24d   :  { %v1498_v58 = vpop.f32.mrb[44].mxu0 }
 0x24e   :  { %v1922_v60 = vadd.f32 %v5341_v12, %v1498_v58  ;;  %v1500_v61 = vpop.f32.mrb[45].mxu0 }
 0x24f   :  { %v1923_v63 = vadd.f32 %v5344_v14, %v1500_v61  ;;  %v1502_v0 = vpop.f32.mrb[46].mxu0 }
 0x250   :  { %v1930_v3 = vmax.f32 %v1922_v60, 0.0  ;;  %v1924_v4 = vadd.f32 %v5341_v12, %v1502_v0  ;;  %v1504_v6 = vpop.f32.mrb[47].mxu0 }
 0x251   :  { %v1931_v9 = vmax.f32 %v1923_v63, 0.0  ;;  %v1925_v10 = vadd.f32 %v5344_v14, %v1504_v6 }
 0x252   :  { %v1934_v13 = vmax.f32 %v1926_v2, %v1930_v3  ;;  %v1932_v15 = vmax.f32 %v1924_v4, 0.0 }
 0x253   :  { %v1935_v18 = vmax.f32 %v1927_v7, %v1931_v9  ;;  %v1933_v19 = vmax.f32 %v1925_v10, 0.0 }
 0x254   :  { %v1936_v20 = vmax.f32 %v1928_v11, %v1932_v15 }
 0x255   :  { %v1938_v21 = vmax.f32 %v1934_v13, %v1935_v18  ;;  %v1937_v23 = vmax.f32 %v1929_v16, %v1933_v19  ;;  %v1508_v24 = vpop.f32.mrb[48].mxu0  ;;  %v4730_v13 = vld [vmem:[%s5813_s3 + $0x100] ss:$8 sps:$4 sm:$0xff]  }
 0x256   :  { %v1510_v25 = vpop.f32.mrb[49].mxu0  ;;  %v1950_v30 = vadd.f32 %v5341_v12, %v1508_v24  ;;  %v4735_v24 = vld [vmem:[%s5813_s3 + $0x114] ss:$8 sps:$4 sm:$0xff]  }
 0x257   :  { %v1939_v26 = vmax.f32 %v1936_v20, %v1937_v23  ;;  %v1512_v27 = vpop.f32.mrb[50].mxu0  ;;  %v1951_v31 = vadd.f32 %v5344_v14, %v1510_v25 }
 0x258   :  { %v1514_v28 = vpop.f32.mrb[51].mxu0  ;;  %v1952_v33 = vadd.f32 %v5341_v12, %v1512_v27  ;;  %v1958_v39 = vmax.f32 %v1950_v30, 0.0 }
 0x259   :  { %v5414_v29 = vpack.c.bf16 %v1939_v26, %v1938_v21  ;;  %v1953_v36 = vadd.f32 %v5344_v14, %v1514_v28  ;;  %v1959_v43 = vmax.f32 %v1951_v31, 0.0  ;;  %v4733_v28 = vld [vmem:[%s5813_s3 + $0x110] ss:$8 sps:$4 sm:$0xff]  }
 0x25a   :  { %v1960_v47 = vmax.f32 %v1952_v33, 0.0 }
 0x25b   :  { %2204 = vmatmul.mubr.bf16.gmra.mrb[24].mxu1 %v5414_v29  ;;  %v1961_v51 = vmax.f32 %v1953_v36, 0.0 }
 0x25c   :  { %2213 = vmatprep.mubr.bf16.mxu1 %v4842_v1 }
 0x25d   :  { %v1518_v32 = vpop.f32.mrb[52].mxu0 }
 0x25e   :  { %v1954_v34 = vadd.f32 %v5341_v12, %v1518_v32  ;;  %v1520_v35 = vpop.f32.mrb[53].mxu0 }
 0x25f   :  { %v1955_v37 = vadd.f32 %v5344_v14, %v1520_v35  ;;  %v1522_v38 = vpop.f32.mrb[54].mxu0  ;;  %v4736_v35 = vld [vmem:[%s5813_s3 + $0x120] ss:$8 sps:$4 sm:$0xff]  }
 0x260   :  { %v1962_v40 = vmax.f32 %v1954_v34, 0.0  ;;  %v1956_v41 = vadd.f32 %v5341_v12, %v1522_v38  ;;  %v1524_v42 = vpop.f32.mrb[55].mxu0  ;;  %v4739_v38 = vld [vmem:[%s5813_s3 + $0x130] ss:$8 sps:$4 sm:$0xff]  }
 0x261   :  { %v1963_v44 = vmax.f32 %v1955_v37, 0.0  ;;  %v1957_v46 = vadd.f32 %v5344_v14, %v1524_v42  ;;  %v4745_v42 = vld [vmem:[%s5813_s3 + $0x150] ss:$8 sps:$4 sm:$0xff]  }
 0x262   :  { %v1966_v48 = vmax.f32 %v1958_v39, %v1962_v40  ;;  %v1964_v50 = vmax.f32 %v1956_v41, 0.0  ;;  %v4744_v39 = vld [vmem:[%s5813_s3 + $0x144] ss:$8 sps:$4 sm:$0xff]   ;;  %v4742_v40 = vld [vmem:[%s5813_s3 + $0x140] ss:$8 sps:$4 sm:$0xff]  }
 0x263   :  { %v1967_v52 = vmax.f32 %v1959_v43, %v1963_v44  ;;  %v1965_v53 = vmax.f32 %v1957_v46, 0.0  ;;  %v4747_v41 = vld [vmem:[%s5813_s3 + $0x154] ss:$8 sps:$4 sm:$0xff]   ;;  %v4750_v43 = vld [vmem:[%s5813_s3 + $0x164] ss:$8 sps:$4 sm:$0xff]  }
 0x264   :  { %v1968_v54 = vmax.f32 %v1960_v47, %v1964_v50  ;;  %v4748_v44 = vld [vmem:[%s5813_s3 + $0x160] ss:$8 sps:$4 sm:$0xff]   ;;  %v4753_v46 = vld [vmem:[%s5813_s3 + $0x174] ss:$8 sps:$4 sm:$0xff]   ;;  %v4751_v47 = vld [vmem:[%s5813_s3 + $0x170] ss:$8 sps:$4 sm:$0xff]  }
 0x265   :  { %v1970_v56 = vmax.f32 %v1966_v48, %v1967_v52  ;;  %v1969_v57 = vmax.f32 %v1961_v51, %v1965_v53  ;;  %v1528_v58 = vpop.f32.mrb[56].mxu0  ;;  %v4756_v48 = vld [vmem:[%s5815_s5 + $0x4] ss:$8 sps:$4 sm:$0xff]   ;;  %v4754_v50 = vld [vmem:[%s5815_s5] ss:$8 sps:$4 sm:$0xff]  }
 0x266   :  { %v1530_v59 = vpop.f32.mrb[57].mxu0  ;;  %v1982_v0 = vadd.f32 %v5341_v12, %v1528_v58  ;;  %v4759_v51 = vld [vmem:[%s5815_s5 + $0x14] ss:$8 sps:$4 sm:$0xff]   ;;  %v4757_v52 = vld [vmem:[%s5815_s5 + $0x10] ss:$8 sps:$4 sm:$0xff]  }
 0x267   :  { %v1971_v60 = vmax.f32 %v1968_v54, %v1969_v57  ;;  %v1532_v61 = vpop.f32.mrb[58].mxu0  ;;  %v1983_v2 = vadd.f32 %v5344_v14, %v1530_v59  ;;  %v4762_v53 = vld [vmem:[%s5815_s5 + $0x24] ss:$8 sps:$4 sm:$0xff]   ;;  %v4760_v54 = vld [vmem:[%s5815_s5 + $0x20] ss:$8 sps:$4 sm:$0xff]  }
 0x268   :  { %v1534_v62 = vpop.f32.mrb[59].mxu0  ;;  %v1984_v4 = vadd.f32 %v5341_v12, %v1532_v61  ;;  %v1990_v15 = vmax.f32 %v1982_v0, 0.0  ;;  %v4768_v57 = vld [vmem:[%s5815_s5 + $0x44] ss:$8 sps:$4 sm:$0xff]   ;;  %v4766_v58 = vld [vmem:[%s5815_s5 + $0x40] ss:$8 sps:$4 sm:$0xff]  }
 0x269   :  { %v5426_v63 = vpack.c.bf16 %v1971_v60, %v1970_v56  ;;  %v1985_v9 = vadd.f32 %v5344_v14, %v1534_v62  ;;  %v1991_v20 = vmax.f32 %v1983_v2, 0.0  ;;  %v4763_v56 = vld [vmem:[%s5815_s5 + $0x30] ss:$8 sps:$4 sm:$0xff]   ;;  %v4777_v59 = vld [vmem:[%s5815_s5 + $0x74] ss:$8 sps:$4 sm:$0xff]  }
 0x26a   :  { %v1992_v25 = vmax.f32 %v1984_v4, 0.0  ;;  %v4775_v60 = vld [vmem:[%s5815_s5 + $0x70] ss:$8 sps:$4 sm:$0xff]   ;;  %v4780_v61 = vld [vmem:[%s5815_s5 + $0x84] ss:$8 sps:$4 sm:$0xff]  }
 0x26b   :  { %2214 = vmatmul.mubr.bf16.gmra.mrb[28].mxu1 %v5426_v63  ;;  %v1993_v30 = vmax.f32 %v1985_v9, 0.0  ;;  %v4778_v62 = vld [vmem:[%s5815_s5 + $0x80] ss:$8 sps:$4 sm:$0xff]   ;;  %v4781_v0 = vld [vmem:[%s5815_s5 + $0x90] ss:$8 sps:$4 sm:$0xff]  }
 0x26c   :  { %2393 = vmatprep.mubr.bf16.mxu1 %v4842_v1  ;;  %v4786_v2 = vld [vmem:[%s5815_s5 + $0xa4] ss:$8 sps:$4 sm:$0xff]   ;;  %v4789_v4 = vld [vmem:[%s5815_s5 + $0xb4] ss:$8 sps:$4 sm:$0xff]   ;;  %v4790_v9 = vld [vmem:[%s5815_s5 + $0xc0] ss:$8 sps:$4 sm:$0xff]  }
 0x26d   :  { %v1538_v3 = vpop.f32.mrb[60].mxu0 }
 0x26e   :  { %v1986_v6 = vadd.f32 %v5341_v12, %v1538_v3  ;;  %v1540_v7 = vpop.f32.mrb[61].mxu0  ;;  %v4784_v3 = vld [vmem:[%s5815_s5 + $0xa0] ss:$8 sps:$4 sm:$0xff]  }
 0x26f   :  { %v1987_v10 = vadd.f32 %v5344_v14, %v1540_v7  ;;  %v1542_v11 = vpop.f32.mrb[62].mxu0  ;;  %v4792_v7 = vld [vmem:[%s5815_s5 + $0xc4] ss:$8 sps:$4 sm:$0xff]  }
 0x270   :  { %v1994_v16 = vmax.f32 %v1986_v6, 0.0  ;;  %v1988_v18 = vadd.f32 %v5341_v12, %v1542_v11  ;;  %v1544_v19 = vpop.f32.mrb[63].mxu0  ;;  %v4738_v12 = vld [vmem:[%s5813_s3 + $0x124] ss:$8 sps:$4 sm:$0xff]   ;;  %v4787_v6 = vld [vmem:[%s5815_s5 + $0xb0] ss:$8 sps:$4 sm:$0xff]  }
 0x271   :  { %v1995_v21 = vmax.f32 %v1987_v10, 0.0  ;;  %v1989_v23 = vadd.f32 %v5344_v14, %v1544_v19  ;;  %v4795_v10 = vld [vmem:[%s5815_s5 + $0xd4] ss:$8 sps:$4 sm:$0xff]   ;;  %v4793_v11 = vld [vmem:[%s5815_s5 + $0xd0] ss:$8 sps:$4 sm:$0xff]  }
 0x272   :  { %v1998_v26 = vmax.f32 %v1990_v15, %v1994_v16  ;;  %v1996_v27 = vmax.f32 %v1988_v18, 0.0  ;;  %v4796_v15 = vld [vmem:[%s5815_s5 + $0xe0] ss:$8 sps:$4 sm:$0xff]   ;;  %v4801_v16 = vld [vmem:[%s5815_s5 + $0xf4] ss:$8 sps:$4 sm:$0xff]  }
 0x273   :  { %v1999_v31 = vmax.f32 %v1991_v20, %v1995_v21  ;;  %v1997_v32 = vmax.f32 %v1989_v23, 0.0  ;;  %2394 = vmatmul.mubr.bf16.vlgmr.msra.gmra.mrb[0].mxu1 %v5354_v45  ;;  %v4741_v45 = vld [vmem:[%s5813_s3 + $0x134] ss:$8 sps:$4 sm:$0xff]   ;;  %v4799_v18 = vld [vmem:[%s5815_s5 + $0xf0] ss:$8 sps:$4 sm:$0xff]  }
 0x274   :  { %v2000_v14 = vmax.f32 %v1992_v25, %v1996_v27  ;;  %2676 = vmatpush1.bf16.msra.mxu1 %v4730_v13  ;;  %2403 = vmatprep.mubr.bf16.mxu1 %v4842_v1  ;;  %v4798_v13 = vld [vmem:[%s5815_s5 + $0xe4] ss:$8 sps:$4 sm:$0xff]   ;;  %v2006_v20 = vld [vmem:[%s5816_s4] sm:$0x3] }
 0x275   :  { %v2002_v33 = vmax.f32 %v1998_v26, %v1999_v31  ;;  %v2001_v34 = vmax.f32 %v1993_v30, %v1997_v32  ;;  %2677 = vmatprep.subr.bf16.mxu1 %v4735_v24  ;;  %v4804_v19 = vld [vmem:[%s5815_s5 + $0x104] ss:$8 sps:$4 sm:$0xff]   ;;  %v5622_v25 = vrot.slane %v2006_v20, %v5330_v5  ;;  %v5625_v27 = vrot.slane %v2006_v20, %v5335_v8 }
 0x277   :  { %v2003_v36 = vmax.f32 %v2000_v14, %v2001_v34 }
 0x278   :  { %2678 = vmatpush1.bf16.msra.mxu1 %v4733_v28 }
 0x279   :  { %2679 = vmatprep.subr.bf16.mxu1 %v4738_v12  ;;  %v5458_v37 = vpack.c.bf16 %v2003_v36, %v2002_v33 }
 0x27b   :  { %2404 = vmatmul.mubr.bf16.gmra.mrb[4].mxu1 %v5366_v17 }
 0x27c   :  { %2413 = vmatprep.mubr.bf16.mxu1 %v4842_v1  ;;  %2680 = vmatpush1.bf16.msra.mxu1 %v4736_v35 }
 0x27d   :  { %2681 = vmatprep.subr.bf16.mxu1 %v4741_v45 }
 0x280   :  { %2682 = vmatpush1.bf16.msra.mxu1 %v4739_v38 }
 0x281   :  { %2683 = vmatprep.subr.bf16.mxu1 %v4744_v39 }
 0x283   :  { %2414 = vmatmul.mubr.bf16.gmra.mrb[8].mxu1 %v5378_v49 }
 0x284   :  { %2423 = vmatprep.mubr.bf16.mxu1 %v4842_v1  ;;  %2684 = vmatpush1.bf16.msra.mxu1 %v4742_v40 }
 0x285   :  { %2685 = vmatprep.subr.bf16.mxu1 %v4747_v41 }
 0x288   :  { %2686 = vmatpush1.bf16.msra.mxu1 %v4745_v42 }
 0x289   :  { %2687 = vmatprep.subr.bf16.mxu1 %v4750_v43 }
 0x28b   :  { %2424 = vmatmul.mubr.bf16.gmra.mrb[12].mxu1 %v5390_v22 }
 0x28c   :  { %2433 = vmatprep.mubr.bf16.mxu1 %v4842_v1  ;;  %2688 = vmatpush1.bf16.msra.mxu1 %v4748_v44 }
 0x28d   :  { %2689 = vmatprep.subr.bf16.mxu1 %v4753_v46 }
 0x290   :  { %2690 = vmatpush1.bf16.msra.mxu1 %v4751_v47 }
 0x291   :  { %3124 = vmatprep.subr.bf16.mxu1 %v4756_v48 }
 0x293   :  { %2434 = vmatmul.mubr.bf16.gmra.mrb[16].mxu1 %v5402_v55 }
 0x294   :  { %2443 = vmatprep.mubr.bf16.mxu1 %v4842_v1 }
 0x29b   :  { %2444 = vmatmul.mubr.bf16.gmra.mrb[20].mxu1 %v5414_v29 }
 0x29c   :  { %2453 = vmatprep.mubr.bf16.mxu1 %v4842_v1 }
 0x2a3   :  { %2454 = vmatmul.mubr.bf16.gmra.mrb[24].mxu1 %v5426_v63 }
 0x2a4   :  { %2463 = vmatprep.mubr.bf16.mxu1 %v4842_v1 }
 0x2ab   :  { %2464 = vmatmul.mubr.bf16.gmra.mrb[28].mxu1 %v5458_v37 }
 0x2ac   :  { %2707 = vmatprep.mubr.bf16.mxu1 %v4842_v1 }
 0x2b3   :  { %2708 = vmatmul.mubr.bf16.vlgmr.msra.gmra.mrb[0].mxu1 %v5366_v17  ;;  %v4765_v17 = vld [vmem:[%s5815_s5 + $0x34] ss:$8 sps:$4 sm:$0xff]  }
 0x2b4   :  { %2717 = vmatprep.mubr.bf16.mxu1 %v4842_v1  ;;  %3125 = vmatpush1.bf16.msra.mxu1 %v4754_v50 }
 0x2b5   :  { %3126 = vmatprep.subr.bf16.mxu1 %v4759_v51 }
 0x2b8   :  { %3127 = vmatpush1.bf16.msra.mxu1 %v4757_v52 }
 0x2b9   :  { %3128 = vmatprep.subr.bf16.mxu1 %v4762_v53 }
 0x2bb   :  { %2718 = vmatmul.mubr.bf16.gmra.mrb[4].mxu1 %v5378_v49  ;;  %v4771_v49 = vld [vmem:[%s5815_s5 + $0x54] ss:$8 sps:$4 sm:$0xff]  }
 0x2bc   :  { %2727 = vmatprep.mubr.bf16.mxu1 %v4842_v1  ;;  %3129 = vmatpush1.bf16.msra.mxu1 %v4760_v54 }
 0x2bd   :  { %3130 = vmatprep.subr.bf16.mxu1 %v4765_v17 }
 0x2c0   :  { %3131 = vmatpush1.bf16.msra.mxu1 %v4763_v56 }
 0x2c1   :  { %3132 = vmatprep.subr.bf16.mxu1 %v4768_v57 }
 0x2c3   :  { %2728 = vmatmul.mubr.bf16.gmra.mrb[8].mxu1 %v5390_v22  ;;  %v4769_v22 = vld [vmem:[%s5815_s5 + $0x50] ss:$8 sps:$4 sm:$0xff]  }
 0x2c4   :  { %2737 = vmatprep.mubr.bf16.mxu1 %v4842_v1  ;;  %3133 = vmatpush1.bf16.msra.mxu1 %v4766_v58 }
 0x2c5   :  { %3134 = vmatprep.subr.bf16.mxu1 %v4771_v49 }
 0x2c8   :  { %3135 = vmatpush1.bf16.msra.mxu1 %v4769_v22 }
 0x2cb   :  { %2738 = vmatmul.mubr.bf16.gmra.mrb[12].mxu1 %v5402_v55  ;;  %v4774_v55 = vld [vmem:[%s5815_s5 + $0x64] ss:$8 sps:$4 sm:$0xff]  }
 0x2cc   :  { %2747 = vmatprep.mubr.bf16.mxu1 %v4842_v1  ;;  %3136 = vmatprep.subr.bf16.mxu1 %v4774_v55 }
 0x2d3   :  { %2748 = vmatmul.mubr.bf16.gmra.mrb[16].mxu1 %v5414_v29  ;;  %v4772_v29 = vld [vmem:[%s5815_s5 + $0x60] ss:$8 sps:$4 sm:$0xff]  }
 0x2d4   :  { %2757 = vmatprep.mubr.bf16.mxu1 %v4842_v1  ;;  %3137 = vmatpush1.bf16.msra.mxu1 %v4772_v29 }
 0x2d5   :  { %3138 = vmatprep.subr.bf16.mxu1 %v4777_v59 }
 0x2d8   :  { %3139 = vmatpush1.bf16.msra.mxu1 %v4775_v60 }
 0x2d9   :  { %3314 = vmatprep.subr.bf16.mxu1 %v4780_v61 }
 0x2db   :  { %2758 = vmatmul.mubr.bf16.gmra.mrb[20].mxu1 %v5426_v63  ;;  %v4783_v63 = vld [vmem:[%s5815_s5 + $0x94] ss:$8 sps:$4 sm:$0xff]  }
 0x2dc   :  { %2767 = vmatprep.mubr.bf16.mxu1 %v4842_v1 }
 0x2e3   :  { %2768 = vmatmul.mubr.bf16.gmra.mrb[24].mxu1 %v5458_v37 }
 0x2e4   :  { %2777 = vmatprep.mubr.bf16.mxu1 %v4842_v1 }
 0x2eb   :  { %2778 = vmatmul.mubr.bf16.gmra.mrb[28].mxu1 %v4842_v1 }
 0x2ec   :  { %3156 = vmatprep.mubr.bf16.mxu1 %v4842_v1 }
 0x2f3   :  { %3157 = vmatmul.mubr.bf16.vlgmr.msra.gmra.mrb[32].mxu1 %v4842_v1 }
 0x2f4   :  { %3166 = vmatprep.mubr.bf16.mxu1 %v4842_v1  ;;  %3315 = vmatpush1.bf16.msra.mxu1 %v4778_v62 }
 0x2f5   :  { %3316 = vmatprep.subr.bf16.mxu1 %v4783_v63 }
 0x2f8   :  { %3317 = vmatpush1.bf16.msra.mxu1 %v4781_v0 }
 0x2f9   :  { %3318 = vmatprep.subr.bf16.mxu1 %v4786_v2 }
 0x2fc   :  { %3319 = vmatpush1.bf16.msra.mxu1 %v4784_v3 }
 0x2fd   :  { %3320 = vmatprep.subr.bf16.mxu1 %v4789_v4 }
 0x300   :  { %3321 = vmatpush1.bf16.msra.mxu1 %v4787_v6 }
 0x301   :  { %3322 = vmatprep.subr.bf16.mxu1 %v4792_v7 }
 0x304   :  { %3323 = vmatpush1.bf16.msra.mxu1 %v4790_v9 }
 0x305   :  { %3324 = vmatprep.subr.bf16.mxu1 %v4795_v10 }
 0x308   :  { %3325 = vmatpush1.bf16.msra.mxu1 %v4793_v11 }
 0x309   :  { %3326 = vmatprep.subr.bf16.mxu1 %v4798_v13 }
 0x30c   :  { %3327 = vmatpush1.bf16.msra.mxu1 %v4796_v15 }
 0x30d   :  { %3328 = vmatprep.subr.bf16.mxu1 %v4801_v16 }
 0x310   :  { %3329 = vmatpush1.bf16.msra.mxu1 %v4799_v18 }
 0x311   :  { %3536 = vmatprep.subr.bf16.mxu1 %v4804_v19 }
 0x386   :  { %v2709_v21 = vpop.f32.mrb[0].mxu1 }
 0x387   :  { %v2711_v23 = vpop.f32.mrb[1].mxu1  ;;  %v2903_v28 = vadd.f32 %v5622_v25, %v2709_v21 }
 0x388   :  { %v2713_v24 = vpop.f32.mrb[2].mxu1  ;;  %v2904_v30 = vadd.f32 %v5625_v27, %v2711_v23 }
 0x389   :  { %v2715_v26 = vpop.f32.mrb[3].mxu1  ;;  %v2905_v32 = vadd.f32 %v5622_v25, %v2713_v24  ;;  %v2911_v36 = vmax.f32 %v2903_v28, 0.0 }
 0x38a   :  { %v2906_v33 = vadd.f32 %v5625_v27, %v2715_v26  ;;  %v2912_v39 = vmax.f32 %v2904_v30, 0.0 }
 0x38b   :  { %v2913_v42 = vmax.f32 %v2905_v32, 0.0 }
 0x38c   :  { %v2914_v46 = vmax.f32 %v2906_v33, 0.0 }
 0x38e   :  { %v2719_v31 = vpop.f32.mrb[4].mxu1 }
 0x38f   :  { %v2907_v12 = vadd.f32 %v5622_v25, %v2719_v31  ;;  %v2721_v14 = vpop.f32.mrb[5].mxu1 }
 0x390   :  { %v2908_v34 = vadd.f32 %v5625_v27, %v2721_v14  ;;  %v2723_v35 = vpop.f32.mrb[6].mxu1 }
 0x391   :  { %v2915_v45 = vmax.f32 %v2907_v12, 0.0  ;;  %v2909_v37 = vadd.f32 %v5622_v25, %v2723_v35  ;;  %v2725_v38 = vpop.f32.mrb[7].mxu1 }
 0x392   :  { %v2916_v40 = vmax.f32 %v2908_v34, 0.0  ;;  %v2910_v41 = vadd.f32 %v5625_v27, %v2725_v38 }
 0x393   :  { %v2919_v43 = vmax.f32 %v2911_v36, %v2915_v45  ;;  %v2917_v44 = vmax.f32 %v2909_v37, 0.0 }
 0x394   :  { %v2920_v47 = vmax.f32 %v2912_v39, %v2916_v40  ;;  %v2918_v48 = vmax.f32 %v2910_v41, 0.0 }
 0x395   :  { %v2921_v50 = vmax.f32 %v2913_v42, %v2917_v44 }
 0x396   :  { %v2923_v51 = vmax.f32 %v2919_v43, %v2920_v47  ;;  %v2922_v52 = vmax.f32 %v2914_v46, %v2918_v48  ;;  %v2729_v53 = vpop.f32.mrb[8].mxu1 }
 0x397   :  { %v2731_v54 = vpop.f32.mrb[9].mxu1  ;;  %v2935_v49 = vadd.f32 %v5622_v25, %v2729_v53 }
 0x398   :  { %v2924_v17 = vmax.f32 %v2921_v50, %v2922_v52  ;;  %v2733_v56 = vpop.f32.mrb[10].mxu1  ;;  %v2936_v22 = vadd.f32 %v5625_v27, %v2731_v54 }
 0x399   :  { %v2735_v57 = vpop.f32.mrb[11].mxu1  ;;  %v2937_v29 = vadd.f32 %v5622_v25, %v2733_v56  ;;  %v2943_v0 = vmax.f32 %v2935_v49, 0.0 }
 0x39a   :  { %v5635_v58 = vpack.c.bf16 %v2924_v17, %v2923_v51  ;;  %v2938_v61 = vadd.f32 %v5625_v27, %v2735_v57  ;;  %v2944_v6 = vmax.f32 %v2936_v22, 0.0 }
 0x39b   :  { %v2945_v10 = vmax.f32 %v2937_v29, 0.0 }
 0x39c   :  { %3167 = vmatmul.mubr.bf16.gmra.mrb[36].mxu1 %v5635_v58  ;;  %v2946_v15 = vmax.f32 %v2938_v61, 0.0 }
 0x39d   :  { %3176 = vmatprep.mubr.bf16.mxu1 %v4842_v1 }
 0x39e   :  { %v2739_v55 = vpop.f32.mrb[12].mxu1 }
 0x39f   :  { %v2939_v59 = vadd.f32 %v5622_v25, %v2739_v55  ;;  %v2741_v60 = vpop.f32.mrb[13].mxu1 }
 0x3a0   :  { %v2940_v62 = vadd.f32 %v5625_v27, %v2741_v60  ;;  %v2743_v63 = vpop.f32.mrb[14].mxu1 }
 0x3a1   :  { %v2947_v2 = vmax.f32 %v2939_v59, 0.0  ;;  %v2941_v3 = vadd.f32 %v5622_v25, %v2743_v63  ;;  %v2745_v4 = vpop.f32.mrb[15].mxu1 }
 0x3a2   :  { %v2948_v7 = vmax.f32 %v2940_v62, 0.0  ;;  %v2942_v9 = vadd.f32 %v5625_v27, %v2745_v4 }
 0x3a3   :  { %v2951_v11 = vmax.f32 %v2943_v0, %v2947_v2  ;;  %v2949_v13 = vmax.f32 %v2941_v3, 0.0 }
 0x3a4   :  { %v2952_v16 = vmax.f32 %v2944_v6, %v2948_v7  ;;  %v2950_v18 = vmax.f32 %v2942_v9, 0.0 }
 0x3a5   :  { %v2953_v19 = vmax.f32 %v2945_v10, %v2949_v13 }
 0x3a6   :  { %v2955_v20 = vmax.f32 %v2951_v11, %v2952_v16  ;;  %v2954_v21 = vmax.f32 %v2946_v15, %v2950_v18  ;;  %v2749_v23 = vpop.f32.mrb[16].mxu1  ;;  %v4802_v11 = vld [vmem:[%s5815_s5 + $0x100] ss:$8 sps:$4 sm:$0xff]   ;;  %v4807_v18 = vld [vmem:[%s5815_s5 + $0x114] ss:$8 sps:$4 sm:$0xff]  }
 0x3a7   :  { %v2751_v24 = vpop.f32.mrb[17].mxu1  ;;  %v2967_v32 = vadd.f32 %v5622_v25, %v2749_v23 }
 0x3a8   :  { %v2956_v26 = vmax.f32 %v2953_v19, %v2954_v21  ;;  %v2753_v28 = vpop.f32.mrb[18].mxu1  ;;  %v2968_v12 = vadd.f32 %v5625_v27, %v2751_v24 }
 0x3a9   :  { %v2755_v30 = vpop.f32.mrb[19].mxu1  ;;  %v2969_v33 = vadd.f32 %v5622_v25, %v2753_v28  ;;  %v2975_v38 = vmax.f32 %v2967_v32, 0.0  ;;  %v4805_v28 = vld [vmem:[%s5815_s5 + $0x110] ss:$8 sps:$4 sm:$0xff]   ;;  %v4810_v32 = vld [vmem:[%s5815_s5 + $0x124] ss:$8 sps:$4 sm:$0xff]  }
 0x3aa   :  { %v5647_v31 = vpack.c.bf16 %v2956_v26, %v2955_v20  ;;  %v2970_v36 = vadd.f32 %v5625_v27, %v2755_v30  ;;  %v2976_v42 = vmax.f32 %v2968_v12, 0.0 }
 0x3ab   :  { %v2977_v46 = vmax.f32 %v2969_v33, 0.0 }
 0x3ac   :  { %3177 = vmatmul.mubr.bf16.gmra.mrb[40].mxu1 %v5647_v31  ;;  %v2978_v50 = vmax.f32 %v2970_v36, 0.0  ;;  %v4814_v36 = vld [vmem:[%s5815_s5 + $0x140] ss:$8 sps:$4 sm:$0xff]  }
 0x3ad   :  { %3186 = vmatprep.mubr.bf16.mxu1 %v4842_v1 }
 0x3ae   :  { %v2759_v14 = vpop.f32.mrb[20].mxu1 }
 0x3af   :  { %v2971_v34 = vadd.f32 %v5622_v25, %v2759_v14  ;;  %v2761_v35 = vpop.f32.mrb[21].mxu1  ;;  %v4813_v14 = vld [vmem:[%s5815_s5 + $0x134] ss:$8 sps:$4 sm:$0xff]  }
 0x3b0   :  { %v2972_v45 = vadd.f32 %v5625_v27, %v2761_v35  ;;  %v2763_v37 = vpop.f32.mrb[22].mxu1  ;;  %v4816_v35 = vld [vmem:[%s5815_s5 + $0x144] ss:$8 sps:$4 sm:$0xff]  }
 0x3b1   :  { %v2979_v39 = vmax.f32 %v2971_v34, 0.0  ;;  %v2973_v40 = vadd.f32 %v5622_v25, %v2763_v37  ;;  %v2765_v41 = vpop.f32.mrb[23].mxu1  ;;  %v4811_v34 = vld [vmem:[%s5815_s5 + $0x130] ss:$8 sps:$4 sm:$0xff]  }
 0x3b2   :  { %v2980_v43 = vmax.f32 %v2972_v45, 0.0  ;;  %v2974_v44 = vadd.f32 %v5625_v27, %v2765_v41  ;;  %v4819_v45 = vld [vmem:[%s5815_s5 + $0x154] ss:$8 sps:$4 sm:$0xff]   ;;  %v4817_v37 = vld [vmem:[%s5815_s5 + $0x150] ss:$8 sps:$4 sm:$0xff]  }
 0x3b3   :  { %v2983_v47 = vmax.f32 %v2975_v38, %v2979_v39  ;;  %v2981_v48 = vmax.f32 %v2973_v40, 0.0  ;;  %v4822_v38 = vld [vmem:[%s5815_s5 + $0x164] ss:$8 sps:$4 sm:$0xff]   ;;  %v4820_v39 = vld [vmem:[%s5815_s5 + $0x160] ss:$8 sps:$4 sm:$0xff]  }
 0x3b4   :  { %v2984_v51 = vmax.f32 %v2976_v42, %v2980_v43  ;;  %v2982_v52 = vmax.f32 %v2974_v44, 0.0  ;;  %v4825_v40 = vld [vmem:[%s5815_s5 + $0x174] ss:$8 sps:$4 sm:$0xff]   ;;  %v4823_v41 = vld [vmem:[%s5815_s5 + $0x170] ss:$8 sps:$4 sm:$0xff]   ;;  %v4826_v42 = vld [vmem:[%s5817_s7 + $0x40] sm:$0xff]  }
 0x3b5   :  { %v2985_v53 = vmax.f32 %v2977_v46, %v2981_v48  ;;  %v4843_v43 = vmov 0.0   ;;  %v4829_v44 = vld [vmem:[%s5817_s7 + $0x58] sm:$0xff]   ;;  %v4830_v46 = vld [vmem:[%s5817_s7 + $0x60] sm:$0xff]   ;;  %v4832_v48 = vld [vmem:[%s5817_s7 + $0x70] sm:$0xff]  }
 0x3b6   :  { %v2987_v54 = vmax.f32 %v2983_v47, %v2984_v51  ;;  %v2986_v17 = vmax.f32 %v2978_v50, %v2982_v52  ;;  %v2769_v56 = vpop.f32.mrb[24].mxu1  ;;  %v4831_v47 = vld [vmem:[%s5817_s7 + $0x68] sm:$0xff]   ;;  %v4833_v50 = vld [vmem:[%s5817_s7 + $0x78] sm:$0xff]   ;;  %v3023_v51 = vld [vmem:[%s5818_s6] sm:$0x3] }
 0x3b7   :  { %v2999_v57 = vadd.f32 %v5622_v25, %v2769_v56  ;;  %v2771_v49 = vpop.f32.mrb[25].mxu1 }
 0x3b8   :  { %v2988_v22 = vmax.f32 %v2985_v53, %v2986_v17  ;;  %v3000_v55 = vadd.f32 %v5625_v27, %v2771_v49  ;;  %v2773_v29 = vpop.f32.mrb[26].mxu1  ;;  %v3669_v17 = vrot.slane %v3023_v51, %v5330_v5 }
 0x3b9   :  { %v3001_v59 = vadd.f32 %v5622_v25, %v2773_v29  ;;  %v2775_v60 = vpop.f32.mrb[27].mxu1  ;;  %v3007_v6 = vmax.f32 %v2999_v57, 0.0  ;;  %v3673_v57 = vrot.slane %v3023_v51, %v5335_v8 }
 0x3ba   :  { %v3002_v61 = vadd.f32 %v5625_v27, %v2775_v60  ;;  %v5663_v62 = vpack.c.bf16 %v2988_v22, %v2987_v54  ;;  %v3008_v13 = vmax.f32 %v3000_v55, 0.0 }
 0x3bb   :  { %v3009_v19 = vmax.f32 %v3001_v59, 0.0 }
 0x3bc   :  { %3187 = vmatmul.mubr.bf16.gmra.mrb[44].mxu1 %v5663_v62  ;;  %v3010_v23 = vmax.f32 %v3002_v61, 0.0 }
 0x3bd   :  { %3346 = vmatprep.mubr.bf16.mxu1 %v4842_v1 }
 0x3be   :  { %v2779_v63 = vpop.f32.mrb[28].mxu1 }
 0x3bf   :  { %v3003_v0 = vadd.f32 %v5622_v25, %v2779_v63  ;;  %v2781_v2 = vpop.f32.mrb[29].mxu1 }
 0x3c0   :  { %v3004_v3 = vadd.f32 %v5625_v27, %v2781_v2  ;;  %v2783_v4 = vpop.f32.mrb[30].mxu1 }
 0x3c1   :  { %v3011_v7 = vmax.f32 %v3003_v0, 0.0  ;;  %v3005_v9 = vadd.f32 %v5622_v25, %v2783_v4  ;;  %v2785_v10 = vpop.f32.mrb[31].mxu1 }
 0x3c2   :  { %v3012_v15 = vmax.f32 %v3004_v3, 0.0  ;;  %v3006_v16 = vadd.f32 %v5625_v27, %v2785_v10 }
 0x3c3   :  { %v3015_v20 = vmax.f32 %v3007_v6, %v3011_v7  ;;  %v3013_v21 = vmax.f32 %v3005_v9, 0.0 }
 0x3c4   :  { %v3016_v24 = vmax.f32 %v3008_v13, %v3012_v15  ;;  %v3014_v26 = vmax.f32 %v3006_v16, 0.0  ;;  %3347 = vmatmul.mubr.bf16.vlgmr.msra.gmra.mrb[32].mxu1 %v5635_v58  ;;  %v4808_v58 = vld [vmem:[%s5815_s5 + $0x120] ss:$8 sps:$4 sm:$0xff]  }
 0x3c5   :  { %v3017_v25 = vmax.f32 %v3009_v19, %v3013_v21  ;;  %3537 = vmatpush1.bf16.msra.mxu1 %v4802_v11  ;;  %3356 = vmatprep.mubr.bf16.mxu1 %v4842_v1 }
 0x3c6   :  { %v3019_v27 = vmax.f32 %v3015_v20, %v3016_v24  ;;  %v3018_v30 = vmax.f32 %v3010_v23, %v3014_v26  ;;  %3538 = vmatprep.subr.bf16.mxu1 %v4807_v18 }
 0x3c8   :  { %v3020_v12 = vmax.f32 %v3017_v25, %v3018_v30 }
 0x3c9   :  { %3539 = vmatpush1.bf16.msra.mxu1 %v4805_v28 }
 0x3ca   :  { %3540 = vmatprep.subr.bf16.mxu1 %v4810_v32  ;;  %v3021_v33 = vpack.c.bf16 %v3020_v12, %v3019_v27 }
 0x3cc   :  { %3357 = vmatmul.mubr.bf16.gmra.mrb[36].mxu1 %v5647_v31 }
 0x3cd   :  { %3541 = vmatpush1.bf16.msra.mxu1 %v4808_v58  ;;  %3366 = vmatprep.mubr.bf16.mxu1 %v4842_v1 }
 0x3ce   :  { %3542 = vmatprep.subr.bf16.mxu1 %v4813_v14 }
 0x3d1   :  { %3543 = vmatpush1.bf16.msra.mxu1 %v4811_v34 }
 0x3d2   :  { %3544 = vmatprep.subr.bf16.mxu1 %v4816_v35 }
 0x3d4   :  { %3367 = vmatmul.mubr.bf16.gmra.mrb[40].mxu1 %v5663_v62 }
 0x3d5   :  { %3545 = vmatpush1.bf16.msra.mxu1 %v4814_v36  ;;  %3376 = vmatprep.mubr.bf16.mxu1 %v4842_v1 }
 0x3d6   :  { %3546 = vmatprep.subr.bf16.mxu1 %v4819_v45 }
 0x3d9   :  { %3547 = vmatpush1.bf16.msra.mxu1 %v4817_v37 }
 0x3da   :  { %3548 = vmatprep.subr.bf16.mxu1 %v4822_v38 }
 0x3dc   :  { %3377 = vmatmul.mubr.bf16.gmra.mrb[44].mxu1 %v3021_v33 }
 0x3dd   :  { %3549 = vmatpush1.bf16.msra.mxu1 %v4820_v39  ;;  %3568 = vmatprep.mubr.bf16.mxu1 %v4842_v1 }
 0x3de   :  { %3550 = vmatprep.subr.bf16.mxu1 %v4825_v40 }
 0x3e1   :  { %3551 = vmatpush1.bf16.msra.mxu1 %v4823_v41 }
 0x3e2   :  { %4295 = vmatprep.subr.bf16.mxu1 %v4843_v43 }
 0x3e4   :  { %3569 = vmatmul.mubr.bf16.vlgmr.msra.gmra.mrb[32].mxu1 %v5647_v31  ;;  %v4827_v31 = vld [vmem:[%s5817_s7 + $0x48] sm:$0xff]  }
 0x3e5   :  { %3578 = vmatprep.mubr.bf16.mxu1 %v4842_v1  ;;  %4296 = vmatpush3.bf16.msra.mxu1 %v4826_v42 }
 0x3e6   :  { %4297 = vmatprep.subr.bf16.mxu1 %v4843_v43 }
 0x3e9   :  { %4298 = vmatpush3.bf16.msra.mxu1 %v4827_v31 }
 0x3ea   :  { %4299 = vmatprep.subr.bf16.mxu1 %v4843_v43 }
 0x3ec   :  { %3579 = vmatmul.mubr.bf16.gmra.mrb[36].mxu1 %v5663_v62 }
 0x3ed   :  { %3588 = vmatprep.mubr.bf16.mxu1 %v4842_v1 }
 0x3f4   :  { %3589 = vmatmul.mubr.bf16.gmra.mrb[40].mxu1 %v3021_v33 }
 0x3f5   :  { %3598 = vmatprep.mubr.bf16.mxu1 %v4842_v1 }
 0x3fc   :  { %3599 = vmatmul.mubr.bf16.gmra.mrb[44].mxu1 %v4842_v1  ;;  %v4828_v1 = vld [vmem:[%s5817_s7 + $0x50] sm:$0xff]  }
 0x3fd   :  { %4300 = vmatpush3.bf16.msra.mxu1 %v4828_v1  ;;  %4311 = vmatprep.mubr.msk.bf16.mxu1 %vm4844_vm0, %v4843_v43 }
 0x3fe   :  { %4301 = vmatprep.subr.bf16.mxu1 %v4843_v43 }
 0x401   :  { %4302 = vmatpush3.bf16.msra.mxu1 %v4829_v44 }
 0x402   :  { %4303 = vmatprep.subr.bf16.mxu1 %v4843_v43 }
 0x405   :  { %4304 = vmatpush3.bf16.msra.mxu1 %v4830_v46 }
 0x406   :  { %4305 = vmatprep.subr.bf16.mxu1 %v4843_v43 }
 0x409   :  { %4306 = vmatpush3.bf16.msra.mxu1 %v4831_v47 }
 0x40a   :  { %4307 = vmatprep.subr.bf16.mxu1 %v4843_v43 }
 0x40d   :  { %4308 = vmatpush3.bf16.msra.mxu1 %v4832_v48 }
 0x40e   :  { %4309 = vmatprep.subr.bf16.mxu1 %v4843_v43 }
 0x411   :  { %4310 = vmatpush3.bf16.msra.mxu1 %v4833_v50 }
 0x412   :  { %4315 = vmatprep.subr.bf16.mxu1 %v4843_v43 }
 0x4b7   :  { %v3570_v52 = vpop.f32.mrb[32].mxu1 }
 0x4b8   :  { %v3572_v53 = vpop.f32.mrb[33].mxu1  ;;  %v3676_v49 = vadd.f32 %v3669_v17, %v3570_v52  ;;  %v4834_v52 = vld [vmem:[%s5817_s7] sm:$0xff]  }
 0x4b9   :  { %v3574_v54 = vpop.f32.mrb[34].mxu1  ;;  %v3677_v22 = vadd.f32 %v3673_v57, %v3572_v53 }
 0x4ba   :  { %v3576_v56 = vpop.f32.mrb[35].mxu1  ;;  %v3678_v29 = vadd.f32 %v3669_v17, %v3574_v54  ;;  %v3684_v0 = vmax.f32 %v3676_v49, 0.0  ;;  %v4835_v54 = vld [vmem:[%s5817_s7 + $0x8] sm:$0xff]  }
 0x4bb   :  { %v3679_v61 = vadd.f32 %v3673_v57, %v3576_v56  ;;  %v3685_v6 = vmax.f32 %v3677_v22, 0.0  ;;  %v4837_v56 = vld [vmem:[%s5817_s7 + $0x18] sm:$0xff]   ;;  %v4839_v49 = vld [vmem:[%s5817_s7 + $0x28] sm:$0xff]   ;;  %v4840_v22 = vld [vmem:[%s5817_s7 + $0x30] sm:$0xff]  }
 0x4bc   :  { %v3686_v5 = vmax.f32 %v3678_v29, 0.0 }
 0x4bd   :  { %v3687_v8 = vmax.f32 %v3679_v61, 0.0 }
 0x4bf   :  { %v3580_v55 = vpop.f32.mrb[36].mxu1 }
 0x4c0   :  { %v3680_v59 = vadd.f32 %v3669_v17, %v3580_v55  ;;  %v3582_v60 = vpop.f32.mrb[37].mxu1  ;;  %v4841_v55 = vld [vmem:[%s5817_s7 + $0x38] sm:$0xff]  }
 0x4c1   :  { %v3681_v62 = vadd.f32 %v3673_v57, %v3582_v60  ;;  %v3584_v63 = vpop.f32.mrb[38].mxu1 }
 0x4c2   :  { %v3688_v2 = vmax.f32 %v3680_v59, 0.0  ;;  %v3682_v3 = vadd.f32 %v3669_v17, %v3584_v63  ;;  %v3586_v4 = vpop.f32.mrb[39].mxu1  ;;  %v4276_v63 = vld [vmem:[%s5819_s8] ss:$0 sm:$0xff] }
 0x4c3   :  { %v3689_v7 = vmax.f32 %v3681_v62, 0.0  ;;  %v3683_v9 = vadd.f32 %v3673_v57, %v3586_v4 }
 0x4c4   :  { %v3692_v10 = vmax.f32 %v3684_v0, %v3688_v2  ;;  %v3690_v11 = vmax.f32 %v3682_v3, 0.0 }
 0x4c5   :  { %v3693_v13 = vmax.f32 %v3685_v6, %v3689_v7  ;;  %v3691_v15 = vmax.f32 %v3683_v9, 0.0 }
 0x4c6   :  { %v3694_v16 = vmax.f32 %v3686_v5, %v3690_v11 }
 0x4c7   :  { %v3696_v18 = vmax.f32 %v3692_v10, %v3693_v13  ;;  %v3695_v19 = vmax.f32 %v3687_v8, %v3691_v15  ;;  %v3590_v20 = vpop.f32.mrb[40].mxu1 }
 0x4c8   :  { %v3592_v21 = vpop.f32.mrb[41].mxu1  ;;  %v3723_v28 = vadd.f32 %v3669_v17, %v3590_v20 }
 0x4c9   :  { %v3697_v23 = vmax.f32 %v3694_v16, %v3695_v19  ;;  %v3594_v24 = vpop.f32.mrb[42].mxu1  ;;  %v3724_v27 = vadd.f32 %v3673_v57, %v3592_v21 }
 0x4ca   :  { %v3596_v26 = vpop.f32.mrb[43].mxu1  ;;  %v3725_v32 = vadd.f32 %v3669_v17, %v3594_v24  ;;  %v3731_v35 = vmax.f32 %v3723_v28, 0.0 }
 0x4cb   :  { %v3698_v25 = vpack.c.bf16 %v3697_v23, %v3696_v18  ;;  %v3726_v14 = vadd.f32 %v3673_v57, %v3596_v26  ;;  %v3732_v38 = vmax.f32 %v3724_v27, 0.0 }
 0x4cc   :  { %v3733_v41 = vmax.f32 %v3725_v32, 0.0 }
 0x4cd   :  { %v3734_v1 = vmax.f32 %v3726_v14, 0.0 }
 0x4cf   :  { %v3600_v30 = vpop.f32.mrb[44].mxu1 }
 0x4d0   :  { %v3727_v12 = vadd.f32 %v3669_v17, %v3600_v30  ;;  %v3602_v58 = vpop.f32.mrb[45].mxu1 }
 0x4d1   :  { %v3728_v33 = vadd.f32 %v3673_v57, %v3602_v58  ;;  %v3604_v34 = vpop.f32.mrb[46].mxu1 }
 0x4d2   :  { %v3735_v36 = vmax.f32 %v3727_v12, 0.0  ;;  %v3729_v45 = vadd.f32 %v3669_v17, %v3604_v34  ;;  %v3606_v37 = vpop.f32.mrb[47].mxu1  ;;  %v4836_v17 = vld [vmem:[%s5817_s7 + $0x10] sm:$0xff]  }
 0x4d3   :  { %v3736_v39 = vmax.f32 %v3728_v33, 0.0  ;;  %v3730_v40 = vadd.f32 %v3673_v57, %v3606_v37  ;;  %v4838_v57 = vld [vmem:[%s5817_s7 + $0x20] sm:$0xff]  }
 0x4d4   :  { %v3739_v42 = vmax.f32 %v3731_v35, %v3735_v36  ;;  %v3737_v31 = vmax.f32 %v3729_v45, 0.0 }
 0x4d5   :  { %v3740_v44 = vmax.f32 %v3732_v38, %v3736_v39  ;;  %v3738_v46 = vmax.f32 %v3730_v40, 0.0 }
 0x4d6   :  { %v3741_v47 = vmax.f32 %v3733_v41, %v3737_v31 }
 0x4d7   :  { %v3743_v48 = vmax.f32 %v3739_v42, %v3740_v44  ;;  %v3742_v50 = vmax.f32 %v3734_v1, %v3738_v46 }
 0x4d9   :  { %v3744_v51 = vmax.f32 %v3741_v47, %v3742_v50 }
 0x4db   :  { %v3745_v53 = vpack.c.bf16 %v3744_v51, %v3743_v48 }
 0x4dd   :  { %4312 = vmatmul.mubr.bf16.vlgmr.msra.gmra.mrb[48].mxu1 %v3745_v53 }
 0x4de   :  { %4316 = vmatpush3.bf16.msra.mxu1 %v4834_v52  ;;  %4331 = vmatprep.mubr.msk.bf16.mxu1 %vm4844_vm0, %v4843_v43 }
 0x4df   :  { %4317 = vmatprep.subr.bf16.mxu1 %v4843_v43 }
 0x4e2   :  { %4318 = vmatpush3.bf16.msra.mxu1 %v4835_v54 }
 0x4e3   :  { %4319 = vmatprep.subr.bf16.mxu1 %v4843_v43 }
 0x4e6   :  { %4320 = vmatpush3.bf16.msra.mxu1 %v4836_v17 }
 0x4e7   :  { %4321 = vmatprep.subr.bf16.mxu1 %v4843_v43 }
 0x4ea   :  { %4322 = vmatpush3.bf16.msra.mxu1 %v4837_v56 }
 0x4eb   :  { %4323 = vmatprep.subr.bf16.mxu1 %v4843_v43 }
 0x4ee   :  { %4324 = vmatpush3.bf16.msra.mxu1 %v4838_v57 }
 0x4ef   :  { %4325 = vmatprep.subr.bf16.mxu1 %v4843_v43 }
 0x4f2   :  { %4326 = vmatpush3.bf16.msra.mxu1 %v4839_v49 }
 0x4f3   :  { %4327 = vmatprep.subr.bf16.mxu1 %v4843_v43 }
 0x4f6   :  { %4328 = vmatpush3.bf16.msra.mxu1 %v4840_v22 }
 0x4f7   :  { %4329 = vmatprep.subr.bf16.mxu1 %v4843_v43 }
 0x4fa   :  { %4330 = vmatpush3.bf16.msra.mxu1 %v4841_v55 }
 0x4fd   :  { %4332 = vmatmul.mubr.bf16.vlgmr.msra.gmra.mrb[52].mxu1 %v3698_v25 }
 0x5b0   :  { %v3845_v29 = vpop.f32.mrb[48].mxu1 }
 0x5b1   :  { %v4313_v59 = vpop.f32.mrb[49].mxu1 }
 0x5b2   :  { %v3848_v60 = vpop.f32.mrb[50].mxu1 }
 0x5b3   :  { %v4314_v61 = vpop.f32.mrb[51].mxu1 }
 0x5d0   :  { %v3934_v62 = vpop.f32.mrb[52].mxu1 }
 0x5d1   :  { %v3935_v0 = vadd.f32 %v3934_v62, %v3845_v29  ;;  %v4333_v2 = vpop.f32.mrb[53].mxu1 }
 0x5d2   :  { %v3937_v3 = vpop.f32.mrb[54].mxu1 }
 0x5d3   :  { %v3948_v4 = vadd.f32 %v4276_v63, %v3935_v0  ;;  %v3938_v6 = vadd.f32 %v3937_v3, %v3848_v60  ;;  %v4334_v7 = vpop.f32.mrb[55].mxu1 }
 0x5d5   :  { %3950 = vst [vmem:[%s5820_s9] sm:$0xff] %v3948_v4  ;;  %v3949_v43 = vadd.f32 %v4276_v63, %v3938_v6 }
 0x5d7   :  { %3951 = vst [vmem:[%s5820_s9 + $0x8] sm:$0xff] %v3949_v43 }

</bundles_post_ra>
